<compile_context>
chip_gen: v7x
topology: tpu7x:2x2x1
jax: 0.10.0
libtpu: 0.0.40
codegen_flags: <defaults>
</compile_context>

<pallas_src>
import functools

import jax
import jax.numpy as jnp
from jax.experimental import pallas as pl
from jax.experimental.pallas import tpu as pltpu

BN_EPS = 1e-5   # torch BatchNorm default


# ----------------------------- fused kernel ---------------------------------
def _cnn1_fused_kernel(xt_ref, wc_ref, bc_ref, wl2_ref, bh_ref, wl3_ref, o_ref,
                       *, ks1, wout, wp, cpad, dense, mxu_dtype):
    # xt_ref : (1, W, H)        input for this batch element, W on sublanes, H on lanes
    # wc_ref : (ks1, H, Cpad)   fused conv1*BN1*dwconv2*BN2 weight (channels padded)
    # bc_ref : (1, Cpad)        fused conv bias
    # wl2_ref: (Wp*Cpad, dense) dense weight, rows ordered (wp, c), BN3 scale folded
    # bh_ref : (1, dense)       BN3 shift
    # wl3_ref: (dense, N)       classifier weight (renormed), transposed
    # o_ref  : (1, 1, N)        log-softmax output

    # -- fused conv (valid conv over W, full-height kernel) as ks1 MXU matmuls --
    acc = jnp.zeros((wout, cpad), jnp.float32)
    for k in range(ks1):                               # static unroll, ks1 small
        xk = xt_ref[0, k:k + wout, :].astype(mxu_dtype)          # (Wout, H)
        acc = acc + jnp.dot(xk, wc_ref[k].astype(mxu_dtype),
                            preferred_element_type=jnp.float32)  # (Wout, Cpad)
    y = acc + bc_ref[...]                                        # fused BN bias
    y = jnp.where(y > 0.0, y, jnp.exp(jnp.minimum(y, 0.0)) - 1.0)  # ELU (alpha=1)

    # -- MaxPool2d((1,3), stride=3) fused with Linear(din->dense) --------------
    # Each pooled row (1, Cpad) is immediately contracted with its 128-row slab
    # of the reordered dense weight, so no flatten/transpose is ever needed.
    # (For very large Wp one would instead flatten to a single lane-dense
    #  (1, Wp*Cpad) @ (Wp*Cpad, dense) matmul.)
    h = jnp.zeros((1, dense), jnp.float32)
    for j in range(wp):                                # static unroll, Wp small
        prow = jnp.max(y[3 * j:3 * j + 3, :], axis=0, keepdims=True)   # (1, Cpad)
        wblk = wl2_ref[j * cpad:(j + 1) * cpad, :]                     # (Cpad, dense)
        h = h + jnp.dot(prow.astype(mxu_dtype), wblk.astype(mxu_dtype),
                        preferred_element_type=jnp.float32)
    h = h + bh_ref[...]                                              # BN1d shift
    h = jnp.where(h > 0.0, h, jnp.exp(jnp.minimum(h, 0.0)) - 1.0)    # ELU

    # -- classifier + log_softmax (pure epilogue, N is tiny) -------------------
    logits = jnp.dot(h.astype(mxu_dtype), wl3_ref[...].astype(mxu_dtype),
                     preferred_element_type=jnp.float32)             # (1, N)
    m = jnp.max(logits, axis=1, keepdims=True)
    lse = jnp.log(jnp.sum(jnp.exp(logits - m), axis=1, keepdims=True)) + m
    o_ref[0] = logits - lse


# ------------------------------- glue helpers --------------------------------
def _renorm_dim0(w, maxnorm):
    # torch.renorm(p=2, dim=0, maxnorm): torch's kernel scales by
    # maxnorm / (norm + 1e-7) when norm > maxnorm.
    flat = w.reshape(w.shape[0], -1)
    norms = jnp.sqrt(jnp.sum(flat * flat, axis=1, keepdims=True))
    scale = jnp.where(norms > maxnorm, maxnorm / (norms + 1e-7), 1.0)
    return (flat * scale).reshape(w.shape)


def _bn_affine(gamma, beta, mean, var):
    scale = gamma / jnp.sqrt(var + BN_EPS)
    shift = beta - mean * scale
    return scale, shift


def cnn1_forward(x, params, *, ks1, f1, f2, dense, N,
                 mxu_dtype=jnp.float32, cpad=128):
    B, Cin, H, W = x.shape
    assert Cin == 1 and H == 22          # hard-coded (22,1) kernel / groups=50 in torch
    assert f1 == f2 and f2 <= cpad
    Wout = W - ks1 + 1
    Wp = Wout // 3
    assert Wout >= 1 and Wp >= 1
    din = f2 * Wp
    assert params["w_l2"].shape == (dense, din)

    # input: drop the singleton channel, put H (the conv contraction dim) on lanes
    xt = jnp.swapaxes(x.astype(jnp.float32)[:, 0, :, :], 1, 2)      # (B, W, H)

    # ---- fold conv1*BN1*depthwise-conv2*BN2 into one (ks1,H)->C conv (exact) ----
    w1 = _renorm_dim0(params["w_conv1"], 2.0).reshape(f1, ks1)      # [c, k]
    s1, b1 = _bn_affine(params["bn1_gamma"], params["bn1_beta"],
                        params["bn1_mean"], params["bn1_var"])
    w1s = (w1 * s1[:, None]).T                                      # [k, c]
    w2 = _renorm_dim0(params["w_conv2"], 2.0).reshape(f2, H)        # [c, h]
    s2, b2 = _bn_affine(params["bn2_gamma"], params["bn2_beta"],
                        params["bn2_mean"], params["bn2_var"])
    w2s = w2 * s2[:, None]                                          # [c, h]
    wcomb = w1s[:, None, :] * jnp.transpose(w2s)[None, :, :]        # [k, h, c]
    bconv = b1 * jnp.sum(w2s, axis=1) + b2                          # [c]
    wcomb_p = jnp.zeros((ks1, H, cpad), jnp.float32).at[:, :, :f2].set(wcomb)
    bconv_p = jnp.zeros((1, cpad), jnp.float32).at[0, :f2].set(bconv)

    # ---- dense head: fold BN1d scale, fold the myreshape permutation into rows ----
    # TODO(synk): nn.LinearModified is not a standard torch module; interpreted as a
    # lazily-shaped bias-free Linear(in_features=f2*Wp, out_features=dense).
    s3, b3 = _bn_affine(params["bn3_gamma"], params["bn3_beta"],
                        params["bn3_mean"], params["bn3_var"])
    wl2 = params["w_l2"].reshape(dense, f2, Wp)                     # [d, c, w]
    wl2 = jnp.transpose(wl2, (2, 1, 0))                             # [w, c, d]
    wl2_p = jnp.zeros((Wp, cpad, dense), jnp.float32).at[:, :f2, :].set(wl2)
    wl2_p = (wl2_p * s3[None, None, :]).reshape(Wp * cpad, dense)
    bh = b3.reshape(1, dense)
    wl3t = _renorm_dim0(params["w_l3"], 0.5).T                      # (dense, N)

    kernel = functools.partial(
        _cnn1_fused_kernel, ks1=ks1, wout=Wout, wp=Wp, cpad=cpad,
        dense=dense, mxu_dtype=mxu_dtype)

    flops = 2 * B * (ks1 * Wout * H * cpad + Wp * cpad * dense + dense * N)
    transcendentals = B * (Wout * cpad + dense + N)
    bytes_accessed = 4 * (B * W * H + ks1 * H * cpad + cpad
                          + Wp * cpad * dense + dense + dense * N + B * N)

    out3 = pl.pallas_call(
        kernel,
        out_shape=jax.ShapeDtypeStruct((B, 1, N), jnp.float32),
        grid=(B,),
        in_specs=[
            pl.BlockSpec((1, W, H), lambda b: (b, 0, 0)),            # per-batch input tile
            pl.BlockSpec((ks1, H, cpad), lambda b: (0, 0, 0)),       # weights: fetched once
            pl.BlockSpec((1, cpad), lambda b: (0, 0)),
            pl.BlockSpec((Wp * cpad, dense), lambda b: (0, 0)),
            pl.BlockSpec((1, dense), lambda b: (0, 0)),
            pl.BlockSpec((dense, N), lambda b: (0, 0)),
        ],
        out_specs=pl.BlockSpec((1, 1, N), lambda b: (b, 0, 0)),
        compiler_params=pltpu.CompilerParams(
            dimension_semantics=("parallel",),        # shard batch across v7x's 2 TCs
            vmem_limit_bytes=64 * 1024 * 1024),       # well under v7x's 64 MiB VMEM
        cost_estimate=pl.CostEstimate(
            flops=flops, transcendentals=transcendentals,
            bytes_accessed=bytes_accessed),
    )(xt, wcomb_p, bconv_p, wl2_p, bh, wl3t)
    return out3.reshape(B, N)


# -------------------- pure-JAX reference (unfused, torch-order) ---------------
def cnn1_reference(x, params, *, ks1, f1, f2, dense, N):
    B, _, H, W = x.shape
    Wout = W - ks1 + 1
    Wp = Wout // 3
    xb = x.astype(jnp.float32)[:, 0]                                 # (B, H, W)
    w1 = _renorm_dim0(params["w_conv1"], 2.0).reshape(f1, ks1)
    cols = jnp.stack([xb[:, :, k:k + Wout] for k in range(ks1)], axis=-1)
    y1 = jnp.einsum("bhwk,ck->bchw", cols, w1)                       # conv1
    s1, b1 = _bn_affine(params["bn1_gamma"], params["bn1_beta"],
                        params["bn1_mean"], params["bn1_var"])
    y1 = y1 * s1[None, :, None, None] + b1[None, :, None, None]
    w2 = _renorm_dim0(params["w_conv2"], 2.0).reshape(f2, H)
    y2 = jnp.einsum("bchw,ch->bcw", y1, w2)                          # depthwise conv
    s2, b2 = _bn_affine(params["bn2_gamma"], params["bn2_beta"],
                        params["bn2_mean"], params["bn2_var"])
    y2 = y2 * s2[None, :, None] + b2[None, :, None]
    y2 = jnp.where(y2 > 0, y2, jnp.exp(jnp.minimum(y2, 0.0)) - 1.0)  # ELU
    pooled = jnp.max(y2[:, :, :Wp * 3].reshape(B, f2, Wp, 3), axis=3)
    z = pooled.reshape(B, f2 * Wp)                                   # myreshape
    h = z @ params["w_l2"].T
    s3, b3 = _bn_affine(params["bn3_gamma"], params["bn3_beta"],
                        params["bn3_mean"], params["bn3_var"])
    h = h * s3 + b3
    h = jnp.where(h > 0, h, jnp.exp(jnp.minimum(h, 0.0)) - 1.0)      # ELU
    logits = h @ _renorm_dim0(params["w_l3"], 0.5).T
    return jax.nn.log_softmax(logits, axis=1)


def init_params(key, *, ks1, f1, f2, dense, N, din):
    ks = jax.random.split(key, 12)
    p = {}
    p["w_conv1"] = 0.3 * jax.random.normal(ks[0], (f1, 1, 1, ks1), jnp.float32)
    p["bn1_gamma"] = 1.0 + 0.1 * jax.random.normal(ks[1], (f1,), jnp.float32)
    p["bn1_beta"] = 0.1 * jax.random.normal(ks[2], (f1,), jnp.float32)
    p["bn1_mean"] = 0.05 * jax.random.normal(ks[3], (f1,), jnp.float32)
    p["bn1_var"] = jax.random.uniform(ks[4], (f1,), jnp.float32, 0.5, 1.5)
    p["w_conv2"] = 0.3 * jax.random.normal(ks[5], (f2, 1, 22, 1), jnp.float32)
    p["bn2_gamma"] = 1.0 + 0.1 * jax.random.normal(ks[6], (f2,), jnp.float32)
    p["bn2_beta"] = 0.1 * jax.random.normal(ks[7], (f2,), jnp.float32)
    p["bn2_mean"] = 0.05 * jax.random.normal(ks[8], (f2,), jnp.float32)
    p["bn2_var"] = jax.random.uniform(ks[9], (f2,), jnp.float32, 0.5, 1.5)
    p["w_l2"] = (1.0 / jnp.sqrt(din)) * jax.random.normal(
        ks[10], (dense, din), jnp.float32)
    k11, k12, k13, k14, k15 = jax.random.split(ks[11], 5)
    p["bn3_gamma"] = 1.0 + 0.1 * jax.random.normal(k11, (dense,), jnp.float32)
    p["bn3_beta"] = 0.1 * jax.random.normal(k12, (dense,), jnp.float32)
    p["bn3_mean"] = 0.05 * jax.random.normal(k13, (dense,), jnp.float32)
    p["bn3_var"] = jax.random.uniform(k14, (dense,), jnp.float32, 0.5, 1.5)
    p["w_l3"] = 0.2 * jax.random.normal(k15, (N, dense), jnp.float32)
    return p


if __name__ == "__main__":
    # f1=f2=50 and H=22 are required by the hard-coded groups=50 / (22,1) kernel.
    ks1, f1, f2, dense, N = 30, 50, 50, 64, 4
    B, H, W = 2, 22, 44
    Wout = W - ks1 + 1                 # 15
    Wp = Wout // 3                     # 5
    din = f2 * Wp                      # 250

    key = jax.random.PRNGKey(0)
    kx, kp = jax.random.split(key)
    x = jax.random.normal(kx, (B, 1, H, W), jnp.float32)
    params = init_params(kp, ks1=ks1, f1=f1, f2=f2, dense=dense, N=N, din=din)

    fwd = jax.jit(functools.partial(
        cnn1_forward, ks1=ks1, f1=f1, f2=f2, dense=dense, N=N))
    out = jax.block_until_ready(fwd(x, params))

    ref = jax.block_until_ready(jax.jit(functools.partial(
        cnn1_reference, ks1=ks1, f1=f1, f2=f2, dense=dense, N=N))(x, params))

    assert out.shape == (B, N)
    assert bool(jnp.all(jnp.isfinite(out)))
    # rows of log_softmax must (approximately) exp-sum to 1
    assert bool(jnp.all(jnp.abs(jnp.sum(jnp.exp(out), axis=1) - 1.0) < 1e-4))
    # fused kernel must match the unfused torch-order reference
    assert bool(jnp.allclose(out, ref, atol=2e-3, rtol=2e-3))
    print("KERNEL_OK")
</pallas_src>

<mosaic_0001>
module attributes {stable_mosaic.version = 11 : i64} {
  func.func @_cnn1_fused_kernel(%arg0: i32, %arg1: memref<1x44x22xf32, #tpu.memory_space<vmem>>, %arg2: memref<30x22x128xf32, #tpu.memory_space<vmem>>, %arg3: memref<1x128xf32, #tpu.memory_space<vmem>>, %arg4: memref<640x64xf32, #tpu.memory_space<vmem>>, %arg5: memref<1x64xf32, #tpu.memory_space<vmem>>, %arg6: memref<64x4xf32, #tpu.memory_space<vmem>>, %arg7: memref<1x1x4xf32, #tpu.memory_space<vmem>>) attributes {dimension_semantics = [#tpu.dimension_semantics<parallel>], iteration_bounds = array<i64: 2>, scalar_prefetch = 0 : i64, scratch_operands = 0 : i64, tpu.core_type = #tpu.core_type<tc>, window_params = [{transform_indices = @transform_0, window_bounds = array<i64: 1, 44, 22>}, {pipeline_mode = #tpu.pipeline_mode<synchronous>, transform_indices = @transform_1, window_bounds = array<i64: 30, 22, 128>}, {pipeline_mode = #tpu.pipeline_mode<synchronous>, transform_indices = @transform_2, window_bounds = array<i64: 1, 128>}, {pipeline_mode = #tpu.pipeline_mode<synchronous>, transform_indices = @transform_3, window_bounds = array<i64: 640, 64>}, {pipeline_mode = #tpu.pipeline_mode<synchronous>, transform_indices = @transform_4, window_bounds = array<i64: 1, 64>}, {pipeline_mode = #tpu.pipeline_mode<synchronous>, transform_indices = @transform_5, window_bounds = array<i64: 64, 4>}, {transform_indices = @transform_6, window_bounds = array<i64: 1, 1, 4>}]} {
    %cst = arith.constant 0.000000e+00 : f32
    %0 = vector.broadcast %cst : f32 to vector<15x128xf32>
    %c0 = arith.constant 0 : index
    %c0_0 = arith.constant 0 : index
    %c0_1 = arith.constant 0 : index
    %1 = vector.load %arg1[%c0, %c0_0, %c0_1] : memref<1x44x22xf32, #tpu.memory_space<vmem>>, vector<1x15x22xf32>
    %2 = vector.shape_cast %1 : vector<1x15x22xf32> to vector<15x22xf32>
    %c0_2 = arith.constant 0 : index
    %c0_3 = arith.constant 0 : index
    %c0_4 = arith.constant 0 : index
    %3 = vector.load %arg2[%c0_2, %c0_3, %c0_4] : memref<30x22x128xf32, #tpu.memory_space<vmem>>, vector<1x22x128xf32>
    %4 = vector.shape_cast %3 : vector<1x22x128xf32> to vector<22x128xf32>
    %cst_5 = arith.constant dense<0.000000e+00> : vector<15x128xf32>
    %5 = tpu.matmul %2, %4, %cst_5 {dimension_numbers = #tpu.dot_dimension_numbers<[1], [0], [0], [1], [0, 0, 1, 1], [], []>} : vector<15x22xf32>, vector<22x128xf32>, vector<15x128xf32> -> vector<15x128xf32>
    %6 = arith.addf %0, %5 : vector<15x128xf32>
    %c0_6 = arith.constant 0 : index
    %c1 = arith.constant 1 : index
    %c0_7 = arith.constant 0 : index
    %7 = vector.load %arg1[%c0_6, %c1, %c0_7] : memref<1x44x22xf32, #tpu.memory_space<vmem>>, vector<1x15x22xf32>
    %8 = vector.shape_cast %7 : vector<1x15x22xf32> to vector<15x22xf32>
    %c1_8 = arith.constant 1 : index
    %c0_9 = arith.constant 0 : index
    %c0_10 = arith.constant 0 : index
    %9 = vector.load %arg2[%c1_8, %c0_9, %c0_10] : memref<30x22x128xf32, #tpu.memory_space<vmem>>, vector<1x22x128xf32>
    %10 = vector.shape_cast %9 : vector<1x22x128xf32> to vector<22x128xf32>
    %cst_11 = arith.constant dense<0.000000e+00> : vector<15x128xf32>
    %11 = tpu.matmul %8, %10, %cst_11 {dimension_numbers = #tpu.dot_dimension_numbers<[1], [0], [0], [1], [0, 0, 1, 1], [], []>} : vector<15x22xf32>, vector<22x128xf32>, vector<15x128xf32> -> vector<15x128xf32>
    %12 = arith.addf %6, %11 : vector<15x128xf32>
    %c0_12 = arith.constant 0 : index
    %c2 = arith.constant 2 : index
    %c0_13 = arith.constant 0 : index
    %13 = vector.load %arg1[%c0_12, %c2, %c0_13] : memref<1x44x22xf32, #tpu.memory_space<vmem>>, vector<1x15x22xf32>
    %14 = vector.shape_cast %13 : vector<1x15x22xf32> to vector<15x22xf32>
    %c2_14 = arith.constant 2 : index
    %c0_15 = arith.constant 0 : index
    %c0_16 = arith.constant 0 : index
    %15 = vector.load %arg2[%c2_14, %c0_15, %c0_16] : memref<30x22x128xf32, #tpu.memory_space<vmem>>, vector<1x22x128xf32>
    %16 = vector.shape_cast %15 : vector<1x22x128xf32> to vector<22x128xf32>
    %cst_17 = arith.constant dense<0.000000e+00> : vector<15x128xf32>
    %17 = tpu.matmul %14, %16, %cst_17 {dimension_numbers = #tpu.dot_dimension_numbers<[1], [0], [0], [1], [0, 0, 1, 1], [], []>} : vector<15x22xf32>, vector<22x128xf32>, vector<15x128xf32> -> vector<15x128xf32>
    %18 = arith.addf %12, %17 : vector<15x128xf32>
    %c0_18 = arith.constant 0 : index
    %c3 = arith.constant 3 : index
    %c0_19 = arith.constant 0 : index
    %19 = vector.load %arg1[%c0_18, %c3, %c0_19] : memref<1x44x22xf32, #tpu.memory_space<vmem>>, vector<1x15x22xf32>
    %20 = vector.shape_cast %19 : vector<1x15x22xf32> to vector<15x22xf32>
    %c3_20 = arith.constant 3 : index
    %c0_21 = arith.constant 0 : index
    %c0_22 = arith.constant 0 : index
    %21 = vector.load %arg2[%c3_20, %c0_21, %c0_22] : memref<30x22x128xf32, #tpu.memory_space<vmem>>, vector<1x22x128xf32>
    %22 = vector.shape_cast %21 : vector<1x22x128xf32> to vector<22x128xf32>
    %cst_23 = arith.constant dense<0.000000e+00> : vector<15x128xf32>
    %23 = tpu.matmul %20, %22, %cst_23 {dimension_numbers = #tpu.dot_dimension_numbers<[1], [0], [0], [1], [0, 0, 1, 1], [], []>} : vector<15x22xf32>, vector<22x128xf32>, vector<15x128xf32> -> vector<15x128xf32>
    %24 = arith.addf %18, %23 : vector<15x128xf32>
    %c0_24 = arith.constant 0 : index
    %c4 = arith.constant 4 : index
    %c0_25 = arith.constant 0 : index
    %25 = vector.load %arg1[%c0_24, %c4, %c0_25] : memref<1x44x22xf32, #tpu.memory_space<vmem>>, vector<1x15x22xf32>
    %26 = vector.shape_cast %25 : vector<1x15x22xf32> to vector<15x22xf32>
    %c4_26 = arith.constant 4 : index
    %c0_27 = arith.constant 0 : index
    %c0_28 = arith.constant 0 : index
    %27 = vector.load %arg2[%c4_26, %c0_27, %c0_28] : memref<30x22x128xf32, #tpu.memory_space<vmem>>, vector<1x22x128xf32>
    %28 = vector.shape_cast %27 : vector<1x22x128xf32> to vector<22x128xf32>
    %cst_29 = arith.constant dense<0.000000e+00> : vector<15x128xf32>
    %29 = tpu.matmul %26, %28, %cst_29 {dimension_numbers = #tpu.dot_dimension_numbers<[1], [0], [0], [1], [0, 0, 1, 1], [], []>} : vector<15x22xf32>, vector<22x128xf32>, vector<15x128xf32> -> vector<15x128xf32>
    %30 = arith.addf %24, %29 : vector<15x128xf32>
    %c0_30 = arith.constant 0 : index
    %c5 = arith.constant 5 : index
    %c0_31 = arith.constant 0 : index
    %31 = vector.load %arg1[%c0_30, %c5, %c0_31] : memref<1x44x22xf32, #tpu.memory_space<vmem>>, vector<1x15x22xf32>
    %32 = vector.shape_cast %31 : vector<1x15x22xf32> to vector<15x22xf32>
    %c5_32 = arith.constant 5 : index
    %c0_33 = arith.constant 0 : index
    %c0_34 = arith.constant 0 : index
    %33 = vector.load %arg2[%c5_32, %c0_33, %c0_34] : memref<30x22x128xf32, #tpu.memory_space<vmem>>, vector<1x22x128xf32>
    %34 = vector.shape_cast %33 : vector<1x22x128xf32> to vector<22x128xf32>
    %cst_35 = arith.constant dense<0.000000e+00> : vector<15x128xf32>
    %35 = tpu.matmul %32, %34, %cst_35 {dimension_numbers = #tpu.dot_dimension_numbers<[1], [0], [0], [1], [0, 0, 1, 1], [], []>} : vector<15x22xf32>, vector<22x128xf32>, vector<15x128xf32> -> vector<15x128xf32>
    %36 = arith.addf %30, %35 : vector<15x128xf32>
    %c0_36 = arith.constant 0 : index
    %c6 = arith.constant 6 : index
    %c0_37 = arith.constant 0 : index
    %37 = vector.load %arg1[%c0_36, %c6, %c0_37] : memref<1x44x22xf32, #tpu.memory_space<vmem>>, vector<1x15x22xf32>
    %38 = vector.shape_cast %37 : vector<1x15x22xf32> to vector<15x22xf32>
    %c6_38 = arith.constant 6 : index
    %c0_39 = arith.constant 0 : index
    %c0_40 = arith.constant 0 : index
    %39 = vector.load %arg2[%c6_38, %c0_39, %c0_40] : memref<30x22x128xf32, #tpu.memory_space<vmem>>, vector<1x22x128xf32>
    %40 = vector.shape_cast %39 : vector<1x22x128xf32> to vector<22x128xf32>
    %cst_41 = arith.constant dense<0.000000e+00> : vector<15x128xf32>
    %41 = tpu.matmul %38, %40, %cst_41 {dimension_numbers = #tpu.dot_dimension_numbers<[1], [0], [0], [1], [0, 0, 1, 1], [], []>} : vector<15x22xf32>, vector<22x128xf32>, vector<15x128xf32> -> vector<15x128xf32>
    %42 = arith.addf %36, %41 : vector<15x128xf32>
    %c0_42 = arith.constant 0 : index
    %c7 = arith.constant 7 : index
    %c0_43 = arith.constant 0 : index
    %43 = vector.load %arg1[%c0_42, %c7, %c0_43] : memref<1x44x22xf32, #tpu.memory_space<vmem>>, vector<1x15x22xf32>
    %44 = vector.shape_cast %43 : vector<1x15x22xf32> to vector<15x22xf32>
    %c7_44 = arith.constant 7 : index
    %c0_45 = arith.constant 0 : index
    %c0_46 = arith.constant 0 : index
    %45 = vector.load %arg2[%c7_44, %c0_45, %c0_46] : memref<30x22x128xf32, #tpu.memory_space<vmem>>, vector<1x22x128xf32>
    %46 = vector.shape_cast %45 : vector<1x22x128xf32> to vector<22x128xf32>
    %cst_47 = arith.constant dense<0.000000e+00> : vector<15x128xf32>
    %47 = tpu.matmul %44, %46, %cst_47 {dimension_numbers = #tpu.dot_dimension_numbers<[1], [0], [0], [1], [0, 0, 1, 1], [], []>} : vector<15x22xf32>, vector<22x128xf32>, vector<15x128xf32> -> vector<15x128xf32>
    %48 = arith.addf %42, %47 : vector<15x128xf32>
    %c0_48 = arith.constant 0 : index
    %c8 = arith.constant 8 : index
    %c0_49 = arith.constant 0 : index
    %49 = vector.load %arg1[%c0_48, %c8, %c0_49] : memref<1x44x22xf32, #tpu.memory_space<vmem>>, vector<1x15x22xf32>
    %50 = vector.shape_cast %49 : vector<1x15x22xf32> to vector<15x22xf32>
    %c8_50 = arith.constant 8 : index
    %c0_51 = arith.constant 0 : index
    %c0_52 = arith.constant 0 : index
    %51 = vector.load %arg2[%c8_50, %c0_51, %c0_52] : memref<30x22x128xf32, #tpu.memory_space<vmem>>, vector<1x22x128xf32>
    %52 = vector.shape_cast %51 : vector<1x22x128xf32> to vector<22x128xf32>
    %cst_53 = arith.constant dense<0.000000e+00> : vector<15x128xf32>
    %53 = tpu.matmul %50, %52, %cst_53 {dimension_numbers = #tpu.dot_dimension_numbers<[1], [0], [0], [1], [0, 0, 1, 1], [], []>} : vector<15x22xf32>, vector<22x128xf32>, vector<15x128xf32> -> vector<15x128xf32>
    %54 = arith.addf %48, %53 : vector<15x128xf32>
    %c0_54 = arith.constant 0 : index
    %c9 = arith.constant 9 : index
    %c0_55 = arith.constant 0 : index
    %55 = vector.load %arg1[%c0_54, %c9, %c0_55] : memref<1x44x22xf32, #tpu.memory_space<vmem>>, vector<1x15x22xf32>
    %56 = vector.shape_cast %55 : vector<1x15x22xf32> to vector<15x22xf32>
    %c9_56 = arith.constant 9 : index
    %c0_57 = arith.constant 0 : index
    %c0_58 = arith.constant 0 : index
    %57 = vector.load %arg2[%c9_56, %c0_57, %c0_58] : memref<30x22x128xf32, #tpu.memory_space<vmem>>, vector<1x22x128xf32>
    %58 = vector.shape_cast %57 : vector<1x22x128xf32> to vector<22x128xf32>
    %cst_59 = arith.constant dense<0.000000e+00> : vector<15x128xf32>
    %59 = tpu.matmul %56, %58, %cst_59 {dimension_numbers = #tpu.dot_dimension_numbers<[1], [0], [0], [1], [0, 0, 1, 1], [], []>} : vector<15x22xf32>, vector<22x128xf32>, vector<15x128xf32> -> vector<15x128xf32>
    %60 = arith.addf %54, %59 : vector<15x128xf32>
    %c0_60 = arith.constant 0 : index
    %c10 = arith.constant 10 : index
    %c0_61 = arith.constant 0 : index
    %61 = vector.load %arg1[%c0_60, %c10, %c0_61] : memref<1x44x22xf32, #tpu.memory_space<vmem>>, vector<1x15x22xf32>
    %62 = vector.shape_cast %61 : vector<1x15x22xf32> to vector<15x22xf32>
    %c10_62 = arith.constant 10 : index
    %c0_63 = arith.constant 0 : index
    %c0_64 = arith.constant 0 : index
    %63 = vector.load %arg2[%c10_62, %c0_63, %c0_64] : memref<30x22x128xf32, #tpu.memory_space<vmem>>, vector<1x22x128xf32>
    %64 = vector.shape_cast %63 : vector<1x22x128xf32> to vector<22x128xf32>
    %cst_65 = arith.constant dense<0.000000e+00> : vector<15x128xf32>
    %65 = tpu.matmul %62, %64, %cst_65 {dimension_numbers = #tpu.dot_dimension_numbers<[1], [0], [0], [1], [0, 0, 1, 1], [], []>} : vector<15x22xf32>, vector<22x128xf32>, vector<15x128xf32> -> vector<15x128xf32>
    %66 = arith.addf %60, %65 : vector<15x128xf32>
    %c0_66 = arith.constant 0 : index
    %c11 = arith.constant 11 : index
    %c0_67 = arith.constant 0 : index
    %67 = vector.load %arg1[%c0_66, %c11, %c0_67] : memref<1x44x22xf32, #tpu.memory_space<vmem>>, vector<1x15x22xf32>
    %68 = vector.shape_cast %67 : vector<1x15x22xf32> to vector<15x22xf32>
    %c11_68 = arith.constant 11 : index
    %c0_69 = arith.constant 0 : index
    %c0_70 = arith.constant 0 : index
    %69 = vector.load %arg2[%c11_68, %c0_69, %c0_70] : memref<30x22x128xf32, #tpu.memory_space<vmem>>, vector<1x22x128xf32>
    %70 = vector.shape_cast %69 : vector<1x22x128xf32> to vector<22x128xf32>
    %cst_71 = arith.constant dense<0.000000e+00> : vector<15x128xf32>
    %71 = tpu.matmul %68, %70, %cst_71 {dimension_numbers = #tpu.dot_dimension_numbers<[1], [0], [0], [1], [0, 0, 1, 1], [], []>} : vector<15x22xf32>, vector<22x128xf32>, vector<15x128xf32> -> vector<15x128xf32>
    %72 = arith.addf %66, %71 : vector<15x128xf32>
    %c0_72 = arith.constant 0 : index
    %c12 = arith.constant 12 : index
    %c0_73 = arith.constant 0 : index
    %73 = vector.load %arg1[%c0_72, %c12, %c0_73] : memref<1x44x22xf32, #tpu.memory_space<vmem>>, vector<1x15x22xf32>
    %74 = vector.shape_cast %73 : vector<1x15x22xf32> to vector<15x22xf32>
    %c12_74 = arith.constant 12 : index
    %c0_75 = arith.constant 0 : index
    %c0_76 = arith.constant 0 : index
    %75 = vector.load %arg2[%c12_74, %c0_75, %c0_76] : memref<30x22x128xf32, #tpu.memory_space<vmem>>, vector<1x22x128xf32>
    %76 = vector.shape_cast %75 : vector<1x22x128xf32> to vector<22x128xf32>
    %cst_77 = arith.constant dense<0.000000e+00> : vector<15x128xf32>
    %77 = tpu.matmul %74, %76, %cst_77 {dimension_numbers = #tpu.dot_dimension_numbers<[1], [0], [0], [1], [0, 0, 1, 1], [], []>} : vector<15x22xf32>, vector<22x128xf32>, vector<15x128xf32> -> vector<15x128xf32>
    %78 = arith.addf %72, %77 : vector<15x128xf32>
    %c0_78 = arith.constant 0 : index
    %c13 = arith.constant 13 : index
    %c0_79 = arith.constant 0 : index
    %79 = vector.load %arg1[%c0_78, %c13, %c0_79] : memref<1x44x22xf32, #tpu.memory_space<vmem>>, vector<1x15x22xf32>
    %80 = vector.shape_cast %79 : vector<1x15x22xf32> to vector<15x22xf32>
    %c13_80 = arith.constant 13 : index
    %c0_81 = arith.constant 0 : index
    %c0_82 = arith.constant 0 : index
    %81 = vector.load %arg2[%c13_80, %c0_81, %c0_82] : memref<30x22x128xf32, #tpu.memory_space<vmem>>, vector<1x22x128xf32>
    %82 = vector.shape_cast %81 : vector<1x22x128xf32> to vector<22x128xf32>
    %cst_83 = arith.constant dense<0.000000e+00> : vector<15x128xf32>
    %83 = tpu.matmul %80, %82, %cst_83 {dimension_numbers = #tpu.dot_dimension_numbers<[1], [0], [0], [1], [0, 0, 1, 1], [], []>} : vector<15x22xf32>, vector<22x128xf32>, vector<15x128xf32> -> vector<15x128xf32>
    %84 = arith.addf %78, %83 : vector<15x128xf32>
    %c0_84 = arith.constant 0 : index
    %c14 = arith.constant 14 : index
    %c0_85 = arith.constant 0 : index
    %85 = vector.load %arg1[%c0_84, %c14, %c0_85] : memref<1x44x22xf32, #tpu.memory_space<vmem>>, vector<1x15x22xf32>
    %86 = vector.shape_cast %85 : vector<1x15x22xf32> to vector<15x22xf32>
    %c14_86 = arith.constant 14 : index
    %c0_87 = arith.constant 0 : index
    %c0_88 = arith.constant 0 : index
    %87 = vector.load %arg2[%c14_86, %c0_87, %c0_88] : memref<30x22x128xf32, #tpu.memory_space<vmem>>, vector<1x22x128xf32>
    %88 = vector.shape_cast %87 : vector<1x22x128xf32> to vector<22x128xf32>
    %cst_89 = arith.constant dense<0.000000e+00> : vector<15x128xf32>
    %89 = tpu.matmul %86, %88, %cst_89 {dimension_numbers = #tpu.dot_dimension_numbers<[1], [0], [0], [1], [0, 0, 1, 1], [], []>} : vector<15x22xf32>, vector<22x128xf32>, vector<15x128xf32> -> vector<15x128xf32>
    %90 = arith.addf %84, %89 : vector<15x128xf32>
    %c0_90 = arith.constant 0 : index
    %c15 = arith.constant 15 : index
    %c0_91 = arith.constant 0 : index
    %91 = vector.load %arg1[%c0_90, %c15, %c0_91] : memref<1x44x22xf32, #tpu.memory_space<vmem>>, vector<1x15x22xf32>
    %92 = vector.shape_cast %91 : vector<1x15x22xf32> to vector<15x22xf32>
    %c15_92 = arith.constant 15 : index
    %c0_93 = arith.constant 0 : index
    %c0_94 = arith.constant 0 : index
    %93 = vector.load %arg2[%c15_92, %c0_93, %c0_94] : memref<30x22x128xf32, #tpu.memory_space<vmem>>, vector<1x22x128xf32>
    %94 = vector.shape_cast %93 : vector<1x22x128xf32> to vector<22x128xf32>
    %cst_95 = arith.constant dense<0.000000e+00> : vector<15x128xf32>
    %95 = tpu.matmul %92, %94, %cst_95 {dimension_numbers = #tpu.dot_dimension_numbers<[1], [0], [0], [1], [0, 0, 1, 1], [], []>} : vector<15x22xf32>, vector<22x128xf32>, vector<15x128xf32> -> vector<15x128xf32>
    %96 = arith.addf %90, %95 : vector<15x128xf32>
    %c0_96 = arith.constant 0 : index
    %c16 = arith.constant 16 : index
    %c0_97 = arith.constant 0 : index
    %97 = vector.load %arg1[%c0_96, %c16, %c0_97] : memref<1x44x22xf32, #tpu.memory_space<vmem>>, vector<1x15x22xf32>
    %98 = vector.shape_cast %97 : vector<1x15x22xf32> to vector<15x22xf32>
    %c16_98 = arith.constant 16 : index
    %c0_99 = arith.constant 0 : index
    %c0_100 = arith.constant 0 : index
    %99 = vector.load %arg2[%c16_98, %c0_99, %c0_100] : memref<30x22x128xf32, #tpu.memory_space<vmem>>, vector<1x22x128xf32>
    %100 = vector.shape_cast %99 : vector<1x22x128xf32> to vector<22x128xf32>
    %cst_101 = arith.constant dense<0.000000e+00> : vector<15x128xf32>
    %101 = tpu.matmul %98, %100, %cst_101 {dimension_numbers = #tpu.dot_dimension_numbers<[1], [0], [0], [1], [0, 0, 1, 1], [], []>} : vector<15x22xf32>, vector<22x128xf32>, vector<15x128xf32> -> vector<15x128xf32>
    %102 = arith.addf %96, %101 : vector<15x128xf32>
    %c0_102 = arith.constant 0 : index
    %c17 = arith.constant 17 : index
    %c0_103 = arith.constant 0 : index
    %103 = vector.load %arg1[%c0_102, %c17, %c0_103] : memref<1x44x22xf32, #tpu.memory_space<vmem>>, vector<1x15x22xf32>
    %104 = vector.shape_cast %103 : vector<1x15x22xf32> to vector<15x22xf32>
    %c17_104 = arith.constant 17 : index
    %c0_105 = arith.constant 0 : index
    %c0_106 = arith.constant 0 : index
    %105 = vector.load %arg2[%c17_104, %c0_105, %c0_106] : memref<30x22x128xf32, #tpu.memory_space<vmem>>, vector<1x22x128xf32>
    %106 = vector.shape_cast %105 : vector<1x22x128xf32> to vector<22x128xf32>
    %cst_107 = arith.constant dense<0.000000e+00> : vector<15x128xf32>
    %107 = tpu.matmul %104, %106, %cst_107 {dimension_numbers = #tpu.dot_dimension_numbers<[1], [0], [0], [1], [0, 0, 1, 1], [], []>} : vector<15x22xf32>, vector<22x128xf32>, vector<15x128xf32> -> vector<15x128xf32>
    %108 = arith.addf %102, %107 : vector<15x128xf32>
    %c0_108 = arith.constant 0 : index
    %c18 = arith.constant 18 : index
    %c0_109 = arith.constant 0 : index
    %109 = vector.load %arg1[%c0_108, %c18, %c0_109] : memref<1x44x22xf32, #tpu.memory_space<vmem>>, vector<1x15x22xf32>
    %110 = vector.shape_cast %109 : vector<1x15x22xf32> to vector<15x22xf32>
    %c18_110 = arith.constant 18 : index
    %c0_111 = arith.constant 0 : index
    %c0_112 = arith.constant 0 : index
    %111 = vector.load %arg2[%c18_110, %c0_111, %c0_112] : memref<30x22x128xf32, #tpu.memory_space<vmem>>, vector<1x22x128xf32>
    %112 = vector.shape_cast %111 : vector<1x22x128xf32> to vector<22x128xf32>
    %cst_113 = arith.constant dense<0.000000e+00> : vector<15x128xf32>
    %113 = tpu.matmul %110, %112, %cst_113 {dimension_numbers = #tpu.dot_dimension_numbers<[1], [0], [0], [1], [0, 0, 1, 1], [], []>} : vector<15x22xf32>, vector<22x128xf32>, vector<15x128xf32> -> vector<15x128xf32>
    %114 = arith.addf %108, %113 : vector<15x128xf32>
    %c0_114 = arith.constant 0 : index
    %c19 = arith.constant 19 : index
    %c0_115 = arith.constant 0 : index
    %115 = vector.load %arg1[%c0_114, %c19, %c0_115] : memref<1x44x22xf32, #tpu.memory_space<vmem>>, vector<1x15x22xf32>
    %116 = vector.shape_cast %115 : vector<1x15x22xf32> to vector<15x22xf32>
    %c19_116 = arith.constant 19 : index
    %c0_117 = arith.constant 0 : index
    %c0_118 = arith.constant 0 : index
    %117 = vector.load %arg2[%c19_116, %c0_117, %c0_118] : memref<30x22x128xf32, #tpu.memory_space<vmem>>, vector<1x22x128xf32>
    %118 = vector.shape_cast %117 : vector<1x22x128xf32> to vector<22x128xf32>
    %cst_119 = arith.constant dense<0.000000e+00> : vector<15x128xf32>
    %119 = tpu.matmul %116, %118, %cst_119 {dimension_numbers = #tpu.dot_dimension_numbers<[1], [0], [0], [1], [0, 0, 1, 1], [], []>} : vector<15x22xf32>, vector<22x128xf32>, vector<15x128xf32> -> vector<15x128xf32>
    %120 = arith.addf %114, %119 : vector<15x128xf32>
    %c0_120 = arith.constant 0 : index
    %c20 = arith.constant 20 : index
    %c0_121 = arith.constant 0 : index
    %121 = vector.load %arg1[%c0_120, %c20, %c0_121] : memref<1x44x22xf32, #tpu.memory_space<vmem>>, vector<1x15x22xf32>
    %122 = vector.shape_cast %121 : vector<1x15x22xf32> to vector<15x22xf32>
    %c20_122 = arith.constant 20 : index
    %c0_123 = arith.constant 0 : index
    %c0_124 = arith.constant 0 : index
    %123 = vector.load %arg2[%c20_122, %c0_123, %c0_124] : memref<30x22x128xf32, #tpu.memory_space<vmem>>, vector<1x22x128xf32>
    %124 = vector.shape_cast %123 : vector<1x22x128xf32> to vector<22x128xf32>
    %cst_125 = arith.constant dense<0.000000e+00> : vector<15x128xf32>
    %125 = tpu.matmul %122, %124, %cst_125 {dimension_numbers = #tpu.dot_dimension_numbers<[1], [0], [0], [1], [0, 0, 1, 1], [], []>} : vector<15x22xf32>, vector<22x128xf32>, vector<15x128xf32> -> vector<15x128xf32>
    %126 = arith.addf %120, %125 : vector<15x128xf32>
    %c0_126 = arith.constant 0 : index
    %c21 = arith.constant 21 : index
    %c0_127 = arith.constant 0 : index
    %127 = vector.load %arg1[%c0_126, %c21, %c0_127] : memref<1x44x22xf32, #tpu.memory_space<vmem>>, vector<1x15x22xf32>
    %128 = vector.shape_cast %127 : vector<1x15x22xf32> to vector<15x22xf32>
    %c21_128 = arith.constant 21 : index
    %c0_129 = arith.constant 0 : index
    %c0_130 = arith.constant 0 : index
    %129 = vector.load %arg2[%c21_128, %c0_129, %c0_130] : memref<30x22x128xf32, #tpu.memory_space<vmem>>, vector<1x22x128xf32>
    %130 = vector.shape_cast %129 : vector<1x22x128xf32> to vector<22x128xf32>
    %cst_131 = arith.constant dense<0.000000e+00> : vector<15x128xf32>
    %131 = tpu.matmul %128, %130, %cst_131 {dimension_numbers = #tpu.dot_dimension_numbers<[1], [0], [0], [1], [0, 0, 1, 1], [], []>} : vector<15x22xf32>, vector<22x128xf32>, vector<15x128xf32> -> vector<15x128xf32>
    %132 = arith.addf %126, %131 : vector<15x128xf32>
    %c0_132 = arith.constant 0 : index
    %c22 = arith.constant 22 : index
    %c0_133 = arith.constant 0 : index
    %133 = vector.load %arg1[%c0_132, %c22, %c0_133] : memref<1x44x22xf32, #tpu.memory_space<vmem>>, vector<1x15x22xf32>
    %134 = vector.shape_cast %133 : vector<1x15x22xf32> to vector<15x22xf32>
    %c22_134 = arith.constant 22 : index
    %c0_135 = arith.constant 0 : index
    %c0_136 = arith.constant 0 : index
    %135 = vector.load %arg2[%c22_134, %c0_135, %c0_136] : memref<30x22x128xf32, #tpu.memory_space<vmem>>, vector<1x22x128xf32>
    %136 = vector.shape_cast %135 : vector<1x22x128xf32> to vector<22x128xf32>
    %cst_137 = arith.constant dense<0.000000e+00> : vector<15x128xf32>
    %137 = tpu.matmul %134, %136, %cst_137 {dimension_numbers = #tpu.dot_dimension_numbers<[1], [0], [0], [1], [0, 0, 1, 1], [], []>} : vector<15x22xf32>, vector<22x128xf32>, vector<15x128xf32> -> vector<15x128xf32>
    %138 = arith.addf %132, %137 : vector<15x128xf32>
    %c0_138 = arith.constant 0 : index
    %c23 = arith.constant 23 : index
    %c0_139 = arith.constant 0 : index
    %139 = vector.load %arg1[%c0_138, %c23, %c0_139] : memref<1x44x22xf32, #tpu.memory_space<vmem>>, vector<1x15x22xf32>
    %140 = vector.shape_cast %139 : vector<1x15x22xf32> to vector<15x22xf32>
    %c23_140 = arith.constant 23 : index
    %c0_141 = arith.constant 0 : index
    %c0_142 = arith.constant 0 : index
    %141 = vector.load %arg2[%c23_140, %c0_141, %c0_142] : memref<30x22x128xf32, #tpu.memory_space<vmem>>, vector<1x22x128xf32>
    %142 = vector.shape_cast %141 : vector<1x22x128xf32> to vector<22x128xf32>
    %cst_143 = arith.constant dense<0.000000e+00> : vector<15x128xf32>
    %143 = tpu.matmul %140, %142, %cst_143 {dimension_numbers = #tpu.dot_dimension_numbers<[1], [0], [0], [1], [0, 0, 1, 1], [], []>} : vector<15x22xf32>, vector<22x128xf32>, vector<15x128xf32> -> vector<15x128xf32>
    %144 = arith.addf %138, %143 : vector<15x128xf32>
    %c0_144 = arith.constant 0 : index
    %c24 = arith.constant 24 : index
    %c0_145 = arith.constant 0 : index
    %145 = vector.load %arg1[%c0_144, %c24, %c0_145] : memref<1x44x22xf32, #tpu.memory_space<vmem>>, vector<1x15x22xf32>
    %146 = vector.shape_cast %145 : vector<1x15x22xf32> to vector<15x22xf32>
    %c24_146 = arith.constant 24 : index
    %c0_147 = arith.constant 0 : index
    %c0_148 = arith.constant 0 : index
    %147 = vector.load %arg2[%c24_146, %c0_147, %c0_148] : memref<30x22x128xf32, #tpu.memory_space<vmem>>, vector<1x22x128xf32>
    %148 = vector.shape_cast %147 : vector<1x22x128xf32> to vector<22x128xf32>
    %cst_149 = arith.constant dense<0.000000e+00> : vector<15x128xf32>
    %149 = tpu.matmul %146, %148, %cst_149 {dimension_numbers = #tpu.dot_dimension_numbers<[1], [0], [0], [1], [0, 0, 1, 1], [], []>} : vector<15x22xf32>, vector<22x128xf32>, vector<15x128xf32> -> vector<15x128xf32>
    %150 = arith.addf %144, %149 : vector<15x128xf32>
    %c0_150 = arith.constant 0 : index
    %c25 = arith.constant 25 : index
    %c0_151 = arith.constant 0 : index
    %151 = vector.load %arg1[%c0_150, %c25, %c0_151] : memref<1x44x22xf32, #tpu.memory_space<vmem>>, vector<1x15x22xf32>
    %152 = vector.shape_cast %151 : vector<1x15x22xf32> to vector<15x22xf32>
    %c25_152 = arith.constant 25 : index
    %c0_153 = arith.constant 0 : index
    %c0_154 = arith.constant 0 : index
    %153 = vector.load %arg2[%c25_152, %c0_153, %c0_154] : memref<30x22x128xf32, #tpu.memory_space<vmem>>, vector<1x22x128xf32>
    %154 = vector.shape_cast %153 : vector<1x22x128xf32> to vector<22x128xf32>
    %cst_155 = arith.constant dense<0.000000e+00> : vector<15x128xf32>
    %155 = tpu.matmul %152, %154, %cst_155 {dimension_numbers = #tpu.dot_dimension_numbers<[1], [0], [0], [1], [0, 0, 1, 1], [], []>} : vector<15x22xf32>, vector<22x128xf32>, vector<15x128xf32> -> vector<15x128xf32>
    %156 = arith.addf %150, %155 : vector<15x128xf32>
    %c0_156 = arith.constant 0 : index
    %c26 = arith.constant 26 : index
    %c0_157 = arith.constant 0 : index
    %157 = vector.load %arg1[%c0_156, %c26, %c0_157] : memref<1x44x22xf32, #tpu.memory_space<vmem>>, vector<1x15x22xf32>
    %158 = vector.shape_cast %157 : vector<1x15x22xf32> to vector<15x22xf32>
    %c26_158 = arith.constant 26 : index
    %c0_159 = arith.constant 0 : index
    %c0_160 = arith.constant 0 : index
    %159 = vector.load %arg2[%c26_158, %c0_159, %c0_160] : memref<30x22x128xf32, #tpu.memory_space<vmem>>, vector<1x22x128xf32>
    %160 = vector.shape_cast %159 : vector<1x22x128xf32> to vector<22x128xf32>
    %cst_161 = arith.constant dense<0.000000e+00> : vector<15x128xf32>
    %161 = tpu.matmul %158, %160, %cst_161 {dimension_numbers = #tpu.dot_dimension_numbers<[1], [0], [0], [1], [0, 0, 1, 1], [], []>} : vector<15x22xf32>, vector<22x128xf32>, vector<15x128xf32> -> vector<15x128xf32>
    %162 = arith.addf %156, %161 : vector<15x128xf32>
    %c0_162 = arith.constant 0 : index
    %c27 = arith.constant 27 : index
    %c0_163 = arith.constant 0 : index
    %163 = vector.load %arg1[%c0_162, %c27, %c0_163] : memref<1x44x22xf32, #tpu.memory_space<vmem>>, vector<1x15x22xf32>
    %164 = vector.shape_cast %163 : vector<1x15x22xf32> to vector<15x22xf32>
    %c27_164 = arith.constant 27 : index
    %c0_165 = arith.constant 0 : index
    %c0_166 = arith.constant 0 : index
    %165 = vector.load %arg2[%c27_164, %c0_165, %c0_166] : memref<30x22x128xf32, #tpu.memory_space<vmem>>, vector<1x22x128xf32>
    %166 = vector.shape_cast %165 : vector<1x22x128xf32> to vector<22x128xf32>
    %cst_167 = arith.constant dense<0.000000e+00> : vector<15x128xf32>
    %167 = tpu.matmul %164, %166, %cst_167 {dimension_numbers = #tpu.dot_dimension_numbers<[1], [0], [0], [1], [0, 0, 1, 1], [], []>} : vector<15x22xf32>, vector<22x128xf32>, vector<15x128xf32> -> vector<15x128xf32>
    %168 = arith.addf %162, %167 : vector<15x128xf32>
    %c0_168 = arith.constant 0 : index
    %c28 = arith.constant 28 : index
    %c0_169 = arith.constant 0 : index
    %169 = vector.load %arg1[%c0_168, %c28, %c0_169] : memref<1x44x22xf32, #tpu.memory_space<vmem>>, vector<1x15x22xf32>
    %170 = vector.shape_cast %169 : vector<1x15x22xf32> to vector<15x22xf32>
    %c28_170 = arith.constant 28 : index
    %c0_171 = arith.constant 0 : index
    %c0_172 = arith.constant 0 : index
    %171 = vector.load %arg2[%c28_170, %c0_171, %c0_172] : memref<30x22x128xf32, #tpu.memory_space<vmem>>, vector<1x22x128xf32>
    %172 = vector.shape_cast %171 : vector<1x22x128xf32> to vector<22x128xf32>
    %cst_173 = arith.constant dense<0.000000e+00> : vector<15x128xf32>
    %173 = tpu.matmul %170, %172, %cst_173 {dimension_numbers = #tpu.dot_dimension_numbers<[1], [0], [0], [1], [0, 0, 1, 1], [], []>} : vector<15x22xf32>, vector<22x128xf32>, vector<15x128xf32> -> vector<15x128xf32>
    %174 = arith.addf %168, %173 : vector<15x128xf32>
    %c0_174 = arith.constant 0 : index
    %c29 = arith.constant 29 : index
    %c0_175 = arith.constant 0 : index
    %175 = vector.load %arg1[%c0_174, %c29, %c0_175] : memref<1x44x22xf32, #tpu.memory_space<vmem>>, vector<1x15x22xf32>
    %176 = vector.shape_cast %175 : vector<1x15x22xf32> to vector<15x22xf32>
    %c29_176 = arith.constant 29 : index
    %c0_177 = arith.constant 0 : index
    %c0_178 = arith.constant 0 : index
    %177 = vector.load %arg2[%c29_176, %c0_177, %c0_178] : memref<30x22x128xf32, #tpu.memory_space<vmem>>, vector<1x22x128xf32>
    %178 = vector.shape_cast %177 : vector<1x22x128xf32> to vector<22x128xf32>
    %cst_179 = arith.constant dense<0.000000e+00> : vector<15x128xf32>
    %179 = tpu.matmul %176, %178, %cst_179 {dimension_numbers = #tpu.dot_dimension_numbers<[1], [0], [0], [1], [0, 0, 1, 1], [], []>} : vector<15x22xf32>, vector<22x128xf32>, vector<15x128xf32> -> vector<15x128xf32>
    %180 = arith.addf %174, %179 : vector<15x128xf32>
    %c0_180 = arith.constant 0 : index
    %c0_181 = arith.constant 0 : index
    %181 = vector.load %arg3[%c0_180, %c0_181] : memref<1x128xf32, #tpu.memory_space<vmem>>, vector<1x128xf32>
    %182 = vector.broadcast %181 : vector<1x128xf32> to vector<15x128xf32>
    %183 = arith.addf %180, %182 : vector<15x128xf32>
    %cst_182 = arith.constant 0.000000e+00 : f32
    %184 = vector.broadcast %cst_182 : f32 to vector<15x128xf32>
    %185 = arith.cmpf ogt, %183, %184 : vector<15x128xf32>
    %cst_183 = arith.constant 0.000000e+00 : f32
    %186 = vector.broadcast %cst_183 : f32 to vector<15x128xf32>
    %187 = arith.minimumf %183, %186 : vector<15x128xf32>
    %188 = math.exp %187 : vector<15x128xf32>
    %cst_184 = arith.constant 1.000000e+00 : f32
    %189 = vector.broadcast %cst_184 : f32 to vector<15x128xf32>
    %190 = arith.subf %188, %189 : vector<15x128xf32>
    %191 = arith.select %185, %183, %190 : vector<15x128xi1>, vector<15x128xf32>
    %cst_185 = arith.constant 0.000000e+00 : f32
    %192 = vector.broadcast %cst_185 : f32 to vector<1x64xf32>
    %193 = vector.extract_strided_slice %191 {offsets = [0, 0], sizes = [3, 128], strides = [1, 1]} : vector<15x128xf32> to vector<3x128xf32>
    %cst_186 = arith.constant dense<0xFF800000> : vector<128xf32>
    %194 = vector.multi_reduction <maximumf>, %193, %cst_186 [0] : vector<3x128xf32> to vector<128xf32>
    %195 = vector.shape_cast %194 : vector<128xf32> to vector<1x128xf32>
    %c0_187 = arith.constant 0 : index
    %c0_188 = arith.constant 0 : index
    %196 = vector.load %arg4[%c0_187, %c0_188] : memref<640x64xf32, #tpu.memory_space<vmem>>, vector<128x64xf32>
    %cst_189 = arith.constant dense<0.000000e+00> : vector<1x64xf32>
    %197 = tpu.matmul %195, %196, %cst_189 {dimension_numbers = #tpu.dot_dimension_numbers<[1], [0], [0], [1], [0, 0, 1, 1], [], []>} : vector<1x128xf32>, vector<128x64xf32>, vector<1x64xf32> -> vector<1x64xf32>
    %198 = arith.addf %192, %197 : vector<1x64xf32>
    %199 = vector.extract_strided_slice %191 {offsets = [3, 0], sizes = [3, 128], strides = [1, 1]} : vector<15x128xf32> to vector<3x128xf32>
    %cst_190 = arith.constant dense<0xFF800000> : vector<128xf32>
    %200 = vector.multi_reduction <maximumf>, %199, %cst_190 [0] : vector<3x128xf32> to vector<128xf32>
    %201 = vector.shape_cast %200 : vector<128xf32> to vector<1x128xf32>
    %c128 = arith.constant 128 : index
    %c0_191 = arith.constant 0 : index
    %202 = vector.load %arg4[%c128, %c0_191] : memref<640x64xf32, #tpu.memory_space<vmem>>, vector<128x64xf32>
    %cst_192 = arith.constant dense<0.000000e+00> : vector<1x64xf32>
    %203 = tpu.matmul %201, %202, %cst_192 {dimension_numbers = #tpu.dot_dimension_numbers<[1], [0], [0], [1], [0, 0, 1, 1], [], []>} : vector<1x128xf32>, vector<128x64xf32>, vector<1x64xf32> -> vector<1x64xf32>
    %204 = arith.addf %198, %203 : vector<1x64xf32>
    %205 = vector.extract_strided_slice %191 {offsets = [6, 0], sizes = [3, 128], strides = [1, 1]} : vector<15x128xf32> to vector<3x128xf32>
    %cst_193 = arith.constant dense<0xFF800000> : vector<128xf32>
    %206 = vector.multi_reduction <maximumf>, %205, %cst_193 [0] : vector<3x128xf32> to vector<128xf32>
    %207 = vector.shape_cast %206 : vector<128xf32> to vector<1x128xf32>
    %c256 = arith.constant 256 : index
    %c0_194 = arith.constant 0 : index
    %208 = vector.load %arg4[%c256, %c0_194] : memref<640x64xf32, #tpu.memory_space<vmem>>, vector<128x64xf32>
    %cst_195 = arith.constant dense<0.000000e+00> : vector<1x64xf32>
    %209 = tpu.matmul %207, %208, %cst_195 {dimension_numbers = #tpu.dot_dimension_numbers<[1], [0], [0], [1], [0, 0, 1, 1], [], []>} : vector<1x128xf32>, vector<128x64xf32>, vector<1x64xf32> -> vector<1x64xf32>
    %210 = arith.addf %204, %209 : vector<1x64xf32>
    %211 = vector.extract_strided_slice %191 {offsets = [9, 0], sizes = [3, 128], strides = [1, 1]} : vector<15x128xf32> to vector<3x128xf32>
    %cst_196 = arith.constant dense<0xFF800000> : vector<128xf32>
    %212 = vector.multi_reduction <maximumf>, %211, %cst_196 [0] : vector<3x128xf32> to vector<128xf32>
    %213 = vector.shape_cast %212 : vector<128xf32> to vector<1x128xf32>
    %c384 = arith.constant 384 : index
    %c0_197 = arith.constant 0 : index
    %214 = vector.load %arg4[%c384, %c0_197] : memref<640x64xf32, #tpu.memory_space<vmem>>, vector<128x64xf32>
    %cst_198 = arith.constant dense<0.000000e+00> : vector<1x64xf32>
    %215 = tpu.matmul %213, %214, %cst_198 {dimension_numbers = #tpu.dot_dimension_numbers<[1], [0], [0], [1], [0, 0, 1, 1], [], []>} : vector<1x128xf32>, vector<128x64xf32>, vector<1x64xf32> -> vector<1x64xf32>
    %216 = arith.addf %210, %215 : vector<1x64xf32>
    %217 = vector.extract_strided_slice %191 {offsets = [12, 0], sizes = [3, 128], strides = [1, 1]} : vector<15x128xf32> to vector<3x128xf32>
    %cst_199 = arith.constant dense<0xFF800000> : vector<128xf32>
    %218 = vector.multi_reduction <maximumf>, %217, %cst_199 [0] : vector<3x128xf32> to vector<128xf32>
    %219 = vector.shape_cast %218 : vector<128xf32> to vector<1x128xf32>
    %c512 = arith.constant 512 : index
    %c0_200 = arith.constant 0 : index
    %220 = vector.load %arg4[%c512, %c0_200] : memref<640x64xf32, #tpu.memory_space<vmem>>, vector<128x64xf32>
    %cst_201 = arith.constant dense<0.000000e+00> : vector<1x64xf32>
    %221 = tpu.matmul %219, %220, %cst_201 {dimension_numbers = #tpu.dot_dimension_numbers<[1], [0], [0], [1], [0, 0, 1, 1], [], []>} : vector<1x128xf32>, vector<128x64xf32>, vector<1x64xf32> -> vector<1x64xf32>
    %222 = arith.addf %216, %221 : vector<1x64xf32>
    %c0_202 = arith.constant 0 : index
    %c0_203 = arith.constant 0 : index
    %223 = vector.load %arg5[%c0_202, %c0_203] : memref<1x64xf32, #tpu.memory_space<vmem>>, vector<1x64xf32>
    %224 = arith.addf %222, %223 : vector<1x64xf32>
    %cst_204 = arith.constant 0.000000e+00 : f32
    %225 = vector.broadcast %cst_204 : f32 to vector<1x64xf32>
    %226 = arith.cmpf ogt, %224, %225 : vector<1x64xf32>
    %cst_205 = arith.constant 0.000000e+00 : f32
    %227 = vector.broadcast %cst_205 : f32 to vector<1x64xf32>
    %228 = arith.minimumf %224, %227 : vector<1x64xf32>
    %229 = math.exp %228 : vector<1x64xf32>
    %cst_206 = arith.constant 1.000000e+00 : f32
    %230 = vector.broadcast %cst_206 : f32 to vector<1x64xf32>
    %231 = arith.subf %229, %230 : vector<1x64xf32>
    %232 = arith.select %226, %224, %231 : vector<1x64xi1>, vector<1x64xf32>
    %c0_207 = arith.constant 0 : index
    %c0_208 = arith.constant 0 : index
    %233 = vector.load %arg6[%c0_207, %c0_208] : memref<64x4xf32, #tpu.memory_space<vmem>>, vector<64x4xf32>
    %cst_209 = arith.constant dense<0.000000e+00> : vector<1x4xf32>
    %234 = tpu.matmul %232, %233, %cst_209 {dimension_numbers = #tpu.dot_dimension_numbers<[1], [0], [0], [1], [0, 0, 1, 1], [], []>} : vector<1x64xf32>, vector<64x4xf32>, vector<1x4xf32> -> vector<1x4xf32>
    %cst_210 = arith.constant dense<0xFF800000> : vector<1xf32>
    %235 = vector.multi_reduction <maximumf>, %234, %cst_210 [1] : vector<1x4xf32> to vector<1xf32>
    %236 = vector.shape_cast %235 : vector<1xf32> to vector<1x1xf32>
    %237 = vector.broadcast %236 : vector<1x1xf32> to vector<1x4xf32>
    %238 = arith.subf %234, %237 : vector<1x4xf32>
    %239 = math.exp %238 : vector<1x4xf32>
    %cst_211 = arith.constant dense<0.000000e+00> : vector<1xf32>
    %240 = vector.multi_reduction <add>, %239, %cst_211 [1] : vector<1x4xf32> to vector<1xf32>
    %241 = vector.shape_cast %240 : vector<1xf32> to vector<1x1xf32>
    %242 = math.log %241 : vector<1x1xf32>
    %243 = arith.addf %242, %236 : vector<1x1xf32>
    %244 = vector.broadcast %243 : vector<1x1xf32> to vector<1x4xf32>
    %245 = arith.subf %234, %244 : vector<1x4xf32>
    %c0_212 = arith.constant 0 : index
    %c0_213 = arith.constant 0 : index
    %c0_214 = arith.constant 0 : index
    %246 = vector.load %arg7[%c0_212, %c0_213, %c0_214] : memref<1x1x4xf32, #tpu.memory_space<vmem>>, vector<1x1x4xf32>
    %247 = vector.shape_cast %246 : vector<1x1x4xf32> to vector<1x4xf32>
    %248 = vector.shape_cast %245 : vector<1x4xf32> to vector<1x1x4xf32>
    tpu.vector_store %arg7[%c0_212, %c0_213, %c0_214], %248 {strides = array<i32>} : memref<1x1x4xf32, #tpu.memory_space<vmem>>, vector<1x1x4xf32>,
    return
  }
  func.func @transform_0(%arg0: i32) -> (i32, i32, i32) {
    %c0_i32 = arith.constant 0 : i32
    %c0_i32_0 = arith.constant 0 : i32
    %c0_i32_1 = arith.constant 0 : i32
    return %arg0, %c0_i32, %c0_i32_0 : i32, i32, i32
  }
  func.func @transform_1(%arg0: i32) -> (i32, i32, i32) {
    %c0_i32 = arith.constant 0 : i32
    %c0_i32_0 = arith.constant 0 : i32
    %c0_i32_1 = arith.constant 0 : i32
    %c0_i32_2 = arith.constant 0 : i32
    return %c0_i32, %c0_i32_0, %c0_i32_1 : i32, i32, i32
  }
  func.func @transform_2(%arg0: i32) -> (i32, i32) {
    %c0_i32 = arith.constant 0 : i32
    %c0_i32_0 = arith.constant 0 : i32
    %c0_i32_1 = arith.constant 0 : i32
    return %c0_i32, %c0_i32_0 : i32, i32
  }
  func.func @transform_3(%arg0: i32) -> (i32, i32) {
    %c0_i32 = arith.constant 0 : i32
    %c0_i32_0 = arith.constant 0 : i32
    %c0_i32_1 = arith.constant 0 : i32
    return %c0_i32, %c0_i32_0 : i32, i32
  }
  func.func @transform_4(%arg0: i32) -> (i32, i32) {
    %c0_i32 = arith.constant 0 : i32
    %c0_i32_0 = arith.constant 0 : i32
    %c0_i32_1 = arith.constant 0 : i32
    return %c0_i32, %c0_i32_0 : i32, i32
  }
  func.func @transform_5(%arg0: i32) -> (i32, i32) {
    %c0_i32 = arith.constant 0 : i32
    %c0_i32_0 = arith.constant 0 : i32
    %c0_i32_1 = arith.constant 0 : i32
    return %c0_i32, %c0_i32_0 : i32, i32
  }
  func.func @transform_6(%arg0: i32) -> (i32, i32, i32) {
    %c0_i32 = arith.constant 0 : i32
    %c0_i32_0 = arith.constant 0 : i32
    %c0_i32_1 = arith.constant 0 : i32
    return %arg0, %c0_i32, %c0_i32_0 : i32, i32, i32
  }
}

</mosaic_0001>

<bundles_post_ra>
// kernel: cnn1_forward.1
= control target key start
LH: loop header
LB: loop body
LE: loop exit
PB: predicated region body
PF: predicated region fallthrough
CT: control target
= control target key end

     0   :  { %11 = vsyncpa [#allocation3], 0  ;;  %s5930_s0 = inlined_call_operand.hbm [shape: f32[2,44,22], index: 0, kind: input, shape index: {}]   ;;  %s5931_s1 = inlined_call_operand.hbm [shape: f32[30,22,128], index: 1, kind: input, shape index: {}]   ;;  %s5932_s2 = inlined_call_operand.hbm [shape: f32[1,128], index: 2, kind: input, shape index: {}]   ;;  %s5933_s3 = inlined_call_operand.hbm [shape: f32[640,64], index: 3, kind: input, shape index: {}]   ;;  %s5934_s4 = inlined_call_operand.hbm [shape: f32[1,64], index: 4, kind: input, shape index: {}]   ;;  %s5935_s5 = inlined_call_operand.hbm [shape: f32[64,4], index: 5, kind: input, shape index: {}]   ;;  %s5936_s6 = inlined_call_operand.hbm [shape: f32[2,1,4], index: 6, kind: output, shape index: {}]  }
   0x1   :  { %13 = vsyncpa [#allocation3 + $0x1], 0 }
   0x2   :  { %14 = vsyncpa [#allocation6], 0 }
   0x3   :  { %15 = vsyncpa [#allocation9], 0 }
   0x4   :  { %16 = vsyncpa [#allocation12], 0 }
   0x5   :  { %17 = vsyncpa [#allocation4], 0 }
   0x6   :  { %19 = vsyncpa [#allocation4 + $0x1], 0  ;;  %s5367_s21 = smov 0   ;;  %s5369_s22 = smov 0  }
   0x7   :  { %s5371_s23 = smov 0   ;;  %s5373_s24 = smov 0  }
   0x8 LB: > { %s5320_s25 = smov [#allocation5]   ;;  %s5388_s27 = sadd.s32 4294967295, %s5318_s24   ;;  %s5318_s24 = sphi %s5373_s24, %s5965_s24   ;;  %s5314_s23 = sphi %s5371_s23, %s5964_s23   ;;  %s5310_s22 = sphi %s5369_s22, %s5963_s22   ;;  %s5306_s21 = sphi %s5367_s21, %s5962_s21  }
   0x9   : > { %s199_s26 = sshll.u32 %s5320_s25, 4  ;;  %p3825_p0 = scmp.ge.s32.totalorder %s5318_s24, 1  ;;  %s5393_s26 = int_to_ptr.vmem [resolvable:$true] %s199_s26 }
   0xa   : > { %p5937_p1 = scmp.eq.s32.totalorder %s5388_s27, 0  ;;  %p187_p2 = scmp.lt.s32.totalorder %s5318_s24, 3 }
   0xb   : > { %s5321_s29 = smov [#allocation8]   ;;  %s5322_s8 = smov [#allocation7]  }
   0xc   : > { %p5395_p3 = pnand %p3825_p0, %p187_p2  ;;  %s223_s30 = sshll.u32 %s5321_s29, 4  ;;  %s5408_s30 = int_to_ptr.vmem [resolvable:$true] %s223_s30 }
   0xd   : > { %s213_s9 = sshll.u32 %s5322_s8, 4  ;;  %s5070_s12 = scalar_lea.hbm %s5931_s1, 11520  ;;  %s5410_s9 = int_to_ptr.vmem [resolvable:$true] %s213_s9 }
   0xe   : > { %s5942_s28 = scalar_select %p5395_p3, 1, 0 }
   0xf   : > { %p4982_p5 = pneg %p5395_p3  ;;  %p5071_p7 = scmp.ne.s32.totalorder %s5931_s1, %s5070_s12 }
  0x10   : > { %p5077_p11 = scmp.lt.u32.totalorder %s5070_s12, %s5931_s1 }
  0x11   : > { %p5404_p6 = pnand %p4982_p5, %p5937_p1 }
  0x13   : > { %p5420_p8 = pneg %p5404_p6 }
  0x15   : > { %p5073_p9 = pnand %p5420_p8, %p5071_p7 }
  0x17   : > { %p5074_p10 = pneg %p5073_p9 }
  0x19   : > { %p5079_p12 = pnand %p5077_p11, %p5074_p10 }
  0x1b   : > { %5082 = shalt.err (!%p5079_p12)
}
  0x1c   : > { %s5083_s18 = scalar_lea.vmem %s5393_s26, 11520  ;;  %p5091_p5 = scmp.lt.s32.totalorder %s5393_s26, %s5393_s26 }
  0x1d   : > { %p5084_p13 = scmp.ne.s32.totalorder %s5393_s26, %s5083_s18  ;;  %p5092_p4 = scmp.lt.s32.totalorder %s5083_s18, %s5083_s18 }
  0x1f   : > { %p5086_p0 = pnand %p5084_p13, %p5420_p8  ;;  %p5093_p7 = por %p5092_p4, %p5091_p5 }
  0x21   : > { %p5087_p2 = pneg %p5086_p0 }
  0x23   : > { %p5094_p9 = pnand %p5093_p7, %p5087_p2 }
  0x25   : > { %5097 = shalt.err (!%p5094_p9)
}
  0x26   : > { %s5939_s19 = smov 128   ;;  %s5940_s20 = smov 8  }
  0x27   : > { %4985 = dma.hbm_to_vmem [thread:$0]  (!%p5404_p6), %s5931_s1, 11520, %s5393_s26, [#allocation6], %s5939_s19, %s5939_s19, %s5940_s20  }
  0x28   : > { %s5098_s11 = scalar_lea.hbm %s5933_s3, 10240 }
  0x29   : > { %p5099_p4 = scmp.ne.s32.totalorder %s5933_s3, %s5098_s11  ;;  %p5105_p12 = scmp.lt.u32.totalorder %s5098_s11, %s5933_s3 }
  0x2b   : > { %p5101_p10 = pnand %p5099_p4, %p5420_p8 }
  0x2d   : > { %p5102_p11 = pneg %p5101_p10 }
  0x2f   : > { %p5107_p13 = pnand %p5105_p12, %p5102_p11 }
  0x31   : > { %5110 = shalt.err (!%p5107_p13)
}
  0x32   : > { %s5111_s26 = scalar_lea.vmem %s5408_s30, 10240  ;;  %p5119_p7 = scmp.lt.s32.totalorder %s5408_s30, %s5408_s30 }
  0x33   : > { %p5112_p0 = scmp.ne.s32.totalorder %s5408_s30, %s5111_s26  ;;  %p5120_p9 = scmp.lt.s32.totalorder %s5111_s26, %s5111_s26 }
  0x35   : > { %p5114_p2 = pnand %p5112_p0, %p5420_p8  ;;  %p5121_p4 = por %p5120_p9, %p5119_p7 }
  0x37   : > { %p5115_p5 = pneg %p5114_p2 }
  0x39   : > { %p5122_p10 = pnand %p5121_p4, %p5115_p5 }
  0x3b   : > { %5125 = shalt.err (!%p5122_p10)
}
  0x3c   : > { %4991 = dma.hbm_to_vmem [thread:$0]  (!%p5404_p6), %s5933_s3, 10240, %s5408_s30, [#allocation9], %s5939_s19, %s5939_s19, %s5940_s20  }
  0x3d   : > { %s5126_s8 = scalar_lea.hbm %s5932_s2, 16 }
  0x3e   : > { %p5127_p11 = scmp.ne.s32.totalorder %s5932_s2, %s5126_s8  ;;  %p5133_p0 = scmp.lt.u32.totalorder %s5126_s8, %s5932_s2 }
  0x40   : > { %p5129_p12 = pnand %p5127_p11, %p5420_p8 }
  0x42   : > { %p5130_p13 = pneg %p5129_p12 }
  0x44   : > { %p5135_p2 = pnand %p5133_p0, %p5130_p13 }
  0x46   : > { %5138 = shalt.err (!%p5135_p2)
}
  0x47   : > { %s5139_s30 = scalar_lea.vmem %s5410_s9, 16  ;;  %s5146_s14 = scalar_lea.vmem %s5410_s9, 32 }
  0x48   : > { %p5140_p5 = scmp.ne.s32.totalorder %s5410_s9, %s5139_s30  ;;  %p5147_p4 = scmp.lt.s32.totalorder %s5410_s9, %s5410_s9 }
  0x49   : > { %p5148_p10 = scmp.lt.s32.totalorder %s5146_s14, %s5139_s30 }
  0x4a   : > { %p5142_p7 = pnand %p5140_p5, %p5420_p8 }
  0x4b   : > { %p5149_p11 = por %p5148_p10, %p5147_p4 }
  0x4c   : > { %p5143_p9 = pneg %p5142_p7 }
  0x4e   : > { %p5150_p12 = pnand %p5149_p11, %p5143_p9 }
  0x50   : > { %5153 = shalt.err (!%p5150_p12)
}
  0x51   : > { %4988 = dma.hbm_to_vmem [thread:$0]  (!%p5404_p6), %s5932_s2, 16, %s5410_s9, [#allocation6]  }
  0x52   : > { %s5325_s17 = smov [#allocation10]   ;;  %s5326_s25 = smov [#allocation11]  }
  0x53   : > { %s237_s18 = sshll.u32 %s5325_s17, 4  ;;  %s247_s29 = sshll.u32 %s5326_s25, 4  ;;  %s238_s18 = int_to_ptr.vmem [resolvable:$true] %s237_s18  ;;  %s248_s29 = int_to_ptr.vmem [resolvable:$true] %s247_s29 }
  0x54   : > { %s5154_s11 = scalar_lea.hbm %s5934_s4, 16 }
  0x55   : > { %p5155_p13 = scmp.ne.s32.totalorder %s5934_s4, %s5154_s11  ;;  %p5161_p5 = scmp.lt.u32.totalorder %s5154_s11, %s5934_s4 }
  0x57   : > { %p5157_p0 = pnand %p5155_p13, %p5420_p8 }
  0x59   : > { %p5158_p2 = pneg %p5157_p0 }
  0x5b   : > { %p5163_p7 = pnand %p5161_p5, %p5158_p2 }
  0x5d   : > { %5166 = shalt.err (!%p5163_p7)
}
  0x5e   : > { %s5167_s9 = scalar_lea.vmem %s238_s18, 16  ;;  %s5174_s16 = scalar_lea.vmem %s238_s18, 32 }
  0x5f   : > { %p5168_p9 = scmp.ne.s32.totalorder %s238_s18, %s5167_s9  ;;  %p5175_p11 = scmp.lt.s32.totalorder %s238_s18, %s238_s18 }
  0x60   : > { %p5176_p12 = scmp.lt.s32.totalorder %s5174_s16, %s5167_s9 }
  0x61   : > { %p5170_p4 = pnand %p5168_p9, %p5420_p8 }
  0x62   : > { %p5177_p1 = por %p5176_p12, %p5175_p11 }
  0x63   : > { %p5171_p10 = pneg %p5170_p4 }
  0x65   : > { %p5178_p3 = pnand %p5177_p1, %p5171_p10 }
  0x67   : > { %5181 = shalt.err (!%p5178_p3)
}
  0x68   : > { %4994 = dma.hbm_to_vmem [thread:$0]  (!%p5404_p6), %s5934_s4, 16, %s238_s18, [#allocation9]  }
  0x69   : > { %s5182_s10 = scalar_lea.hbm %s5935_s5, 1024 }
  0x6a   : > { %p5183_p13 = scmp.ne.s32.totalorder %s5935_s5, %s5182_s10  ;;  %p5189_p3 = scmp.lt.u32.totalorder %s5182_s10, %s5935_s5 }
  0x6c   : > { %p5185_p0 = pnand %p5183_p13, %p5420_p8 }
  0x6e   : > { %p5186_p1 = pneg %p5185_p0 }
  0x70   : > { %p5191_p2 = pnand %p5189_p3, %p5186_p1 }
  0x72   : > { %5194 = shalt.err (!%p5191_p2)
}
  0x73   : > { %s5195_s14 = scalar_lea.vmem %s248_s29, 1024  ;;  %p5203_p4 = scmp.lt.s32.totalorder %s248_s29, %s248_s29 }
  0x74   : > { %p5196_p5 = scmp.ne.s32.totalorder %s248_s29, %s5195_s14  ;;  %p5204_p10 = scmp.lt.s32.totalorder %s5195_s14, %s5195_s14 }
  0x76   : > { %p5198_p7 = pnand %p5196_p5, %p5420_p8  ;;  %p5205_p11 = por %p5204_p10, %p5203_p4 }
  0x78   : > { %p5199_p9 = pneg %p5198_p7 }
  0x7a   : > { %p5206_p12 = pnand %p5205_p11, %p5199_p9 }
  0x7c   : > { %5209 = shalt.err (!%p5206_p12)
}
  0x7d   : > { %4997 = dma.hbm_to_vmem [thread:$0]  (!%p5404_p6), %s5935_s5, 1024, %s248_s29, [#allocation12], %s5939_s19, %s5939_s19, %s5940_s20  }
  0x7e   : > { %s3824_s7 = sadd.s32 4294967294, %s5318_s24   ;;  %s5535_s15 = sadd.s32 1, %s5318_s24  }
  0x7f   : > { %s32_s16 = sadd.s32 1, %s5314_s23  ;;  %s29_s26 = ssub.s32 %s5318_s24, %s5535_s15 }
  0x80   : > { %p39_p8 = scmp.ne.s32.totalorder %s5314_s23, %s5310_s22  ;;  %p30_p13 = scmp.eq.s32.totalorder %s29_s26, 0 }
  0x81   : > { %p40_p0 = scmp.eq.s32.totalorder %s5318_s24, 0  ;;  %p45_p1 = scmp.ne.s32.totalorder %s5310_s22, %s5306_s21 }
  0x82   : > { %p174_p3 = scmp.eq.s32.totalorder %s5388_s27, 1  ;;  %p5945_p5 = scmp.eq.s32.totalorder %s5388_s27, 0 }
  0x83   : > { %s5547_s17 = scalar_select %p30_p13, %s5314_s23, %s32_s16  }
  0x84   : > { %p41_p2 = por %p40_p0, %p39_p8  ;;  %p5551_p7 = por %p5945_p5, %p45_p1 }
  0x85   : > { %p5555_p6 = por %p174_p3, %p39_p8  ;;  %p180_p9 = scmp.eq.s32.totalorder %s3824_s7, 1 }
  0x86   : > { %p5011_p4 = scmp.lt.s32.totalorder %s5318_s24, 2  ;;  %s261_s8 = sand.u32 1, %s5314_s23  }
  0x87   : > { %s5947_s29 = scalar_select %p5555_p6, 1, 0 }
  0x88   : > { %p5561_p10 = por %p180_p9, %p45_p1  ;;  %s4955_s11 = smul.u32 48, %s261_s8 }
  0x89   : > { %p5565_p11 = pnand %p5011_p4, %p41_p2  ;;  %s4956_s13 = smul.u32 768, %s5318_s24 }
  0x8a   : > { %s5948_s10 = scalar_select %p5561_p10, 1, 0 }
  0x8b   : > { %s5573_s18 = scalar_lea.hbm %s5930_s0, %s4956_s13  ;;  %s265_s9 = scalar_lea.vmem [#allocation2], %s4955_s11 }
  0x8c   : > { %s272_s7 = sshll.u32 %s265_s9, 4  ;;  %s5577_s16 = scalar_lea.sflag [#allocation3], %s261_s8  ;;  %s5575_s7 = int_to_ptr.vmem [resolvable:$true] %s272_s7 }
  0x8d   : > { %s5210_s26 = scalar_lea.hbm %s5573_s18, 768  ;;  %p5212_p8 = pneg %p5565_p11 }
  0x8e   : > { %p5211_p12 = scmp.ne.s32.totalorder %s5573_s18, %s5210_s26  ;;  %s5215_s14 = scalar_lea.hbm %s5930_s0, 1536 }
  0x8f   : > { %p5216_p1 = scmp.lt.u32.totalorder %s5573_s18, %s5930_s0  ;;  %p5217_p3 = scmp.lt.u32.totalorder %s5215_s14, %s5210_s26 }
  0x90   : > { %p5213_p13 = pnand %p5212_p8, %p5211_p12  ;;  %p5219_p5 = scmp.lt.u32.totalorder %s5210_s26, %s5573_s18 }
  0x91   : > { %p5218_p2 = por %p5217_p3, %p5216_p1 }
  0x92   : > { %p5214_p0 = pneg %p5213_p13 }
  0x93   : > { %p5220_p9 = por %p5219_p5, %p5218_p2 }
  0x95   : > { %p5221_p4 = pnand %p5220_p9, %p5214_p0 }
  0x97   : > { %5224 = shalt.err (!%p5221_p4)
}
  0x98   : > { %s5225_s8 = scalar_lea.vmem %s5575_s7, 768  ;;  %s5327_s11 = smov [#allocation2]  }
  0x99   : > { %p5226_p12 = scmp.ne.s32.totalorder %s5575_s7, %s5225_s8  ;;  %s5230_s9 = sshll.u32 %s5327_s11, 4  ;;  %s5231_s9 = int_to_ptr.vmem [resolvable:$false] %s5230_s9 }
  0x9a   : > { %s5232_s19 = scalar_lea.vmem %s5231_s9, 1536  ;;  %p5233_p6 = scmp.lt.s32.totalorder %s5575_s7, %s5231_s9 }
  0x9b   : > { %p5228_p13 = pnand %p5226_p12, %p5212_p8  ;;  %p5234_p1 = scmp.lt.s32.totalorder %s5232_s19, %s5225_s8 }
  0x9d   : > { %p5229_p10 = pneg %p5228_p13  ;;  %p5235_p3 = por %p5234_p1, %p5233_p6 }
  0x9f   : > { %p5236_p2 = pnand %p5235_p3, %p5229_p10 }
  0xa1   : > { %5239 = shalt.err (!%p5236_p2)
}
  0xa2   : > { %s5950_s20 = smov 8   ;;  %s5951_s26 = smov 128  }
  0xa3   : > { %5001 = dma.hbm_to_vmem [thread:$0]  (!%p5565_p11), %s5573_s18, 768, %s5575_s7, %s5577_s16, %s5951_s26, %s5951_s26, %s5950_s20  }
  0xa4   : > { %p5952_p8 = scmp.ne.s32.totalorder %s5942_s28, 0 }
  0xa5   : > { %s5611_s13 = sand.u32 (!%p5952_p8), 1, %s5310_s22  }
  0xa6   : > { %284 = sbr.rel (%p5952_p8) target bundleno = 1577 (0x629), region = 44  ;;  %s287_s14 = scalar_lea.sflag (!%p5952_p8), [#allocation3], %s5611_s13 }
  0xa7   : > { %s4957_s30 = smul.u32 (!%p5952_p8), 48, %s5611_s13 }
  0xa9   : > { %s5615_s8 = scalar_lea.vmem (!%p5952_p8), [#allocation2], %s4957_s30 }
  0xad   : > { %5285 = dma.done.wait (%p5551_p7), %s287_s14, 768  }
  0xae   : > { %5287 = vsyncadd (%p5551_p7), %s287_s14, 4294966528  ;;  %p5953_p6 = scmp.eq.s32.totalorder %s5388_s27, 0 }
  0xb0   : > { %5289 = dma.done.wait (%p5953_p6), [#allocation6], 11536   ;;  %p5954_p10 = pmov %p5953_p6 }
  0xb1   : > { %p5955_p11 = pmov %p5953_p6 }
  0xb2   : > { %5291 = vsyncadd (%p5954_p10), [#allocation6], 4294955760 }
  0xb3   : > { %5293 = dma.done.wait (%p5955_p11), [#allocation9], 10256   ;;  %p5956_p0 = pmov %p5953_p6 }
  0xb5   : > { %5295 = vsyncadd (%p5956_p0), [#allocation9], 4294957040  ;;  %p5957_p5 = pmov %p5956_p0 }
  0xb6   : > { %p5958_p9 = pmov %p5956_p0 }
  0xb7   : > { %5297 = dma.done.wait (%p5957_p5), [#allocation12], 1024  }
  0xb8   : > { %5299 = vsyncadd (%p5958_p9), [#allocation12], 4294966272  ;;  %vm349_vm0 = vcmask 179200   ;;  %v346_v0 = vld [vmem:[#allocation5 + $0x18] sm:$0xff]  ;;  %v347_v1 = vld [vmem:[#allocation5 + $0x20] sm:$0xff]  ;;  %vm356_vm1 = vcmask 1045504  }
  0xb9   : > { %v4645_v2 = vpack.c.bf16 %v347_v1, %v346_v0  ;;  %v343_v3 = vld [vmem:[%s5615_s8 + $0x1] sm:$0xff]  ;;  %v344_v8 = vld [vmem:[%s5615_s8 + $0x9] sm:$0x7f]  ;;  %v1072_v56 = vld [vmem:[%s5615_s8 + $0x10] sm:$0x7f]  ;;  %vm5329_vm2 = vmmov 0  }
  0xba   : > { %v348_v4 = vld [vmem:[#allocation5 + $0x28] sm:$0x3f]  ;;  %4187 = vmatprep.mubr.msk.f32.mxu0 %vm349_vm0, %v343_v3  ;;  %v340_v5 = vld [vmem:[#allocation5] sm:$0xff]  ;;  %v342_v10 = vld [vmem:[#allocation5 + $0x10] sm:$0x3f]  ;;  %vm3306_vm3 = vcmask 1040384  }
  0xbb   : > { %v341_v6 = vld [vmem:[#allocation5 + $0x8] sm:$0xff]  ;;  %4646 = vmatprep.subr.bf16.mxu0 %v4645_v2  ;;  %v338_v9 = vld [vmem:[%s5615_s8] sm:$0xff]  ;;  %v523_v12 = vld [vmem:[#allocation5 + $0x38] sm:$0xff]  ;;  %vm3140_vm5 = vcmask 1045507   ;;  %vm3304_vm7 = vcmask 1047558   ;;  %vm3116_vm8 = vcmask 1042432  }
  0xbc   : > { %4648 = vmatpush3.bf16.msra.mxu0 %v4645_v2  ;;  %v4649_v7 = vpack.c.bf16 %v341_v6, %v340_v5  ;;  %v522_v11 = vld [vmem:[#allocation5 + $0x30] sm:$0xff]  ;;  %v339_v14 = vld [vmem:[%s5615_s8 + $0x8] sm:$0x7f]  ;;  %v524_v16 = vld [vmem:[#allocation5 + $0x40] sm:$0x3f]  ;;  %vm3402_vm9 = vcmask 1043457  }
  0xbd   : > { %4185 = vmatprep.subr.msk.mxu0 %vm356_vm1, %v348_v4  ;;  %v4653_v13 = vpack.c.bf16 %v523_v12, %v522_v11  ;;  %v519_v15 = vld [vmem:[%s5615_s8 + $0x2] sm:$0xff]  ;;  %v520_v20 = vld [vmem:[%s5615_s8 + $0xa] sm:$0x7f]  ;;  %v1164_v62 = vld [vmem:[%s5615_s8 + $0x11] sm:$0x7f]  ;;  %vm3497_vm10 = vcmask 1046532  }
  0xbe   : > { %v614_v17 = vld [vmem:[#allocation5 + $0x48] sm:$0xff]  ;;  %v615_v18 = vld [vmem:[#allocation5 + $0x50] sm:$0xff]  ;;  %v616_v22 = vld [vmem:[#allocation5 + $0x58] sm:$0x3f]  ;;  %vm3608_vm11 = vcmask 523264   ;;  %vm3682_vm13 = vcmask 24576  }
  0xbf   : > { %v4657_v19 = vpack.c.bf16 %v615_v18, %v614_v17  ;;  %v611_v21 = vld [vmem:[%s5615_s8 + $0x3] sm:$0xff]  ;;  %v612_v26 = vld [vmem:[%s5615_s8 + $0xb] sm:$0x7f]  ;;  %s3934_s28 = sshll.u32 %s5388_s27, 4  ;;  %s337_s25 = scalar_lea.vmem [#allocation13], %s5611_s13 }
  0xc0   : > { %4186 = vmatpush3.msk.msra.mxu0 %vm356_vm1, %v348_v4  ;;  %v706_v23 = vld [vmem:[#allocation5 + $0x60] sm:$0xff]  ;;  %v707_v24 = vld [vmem:[#allocation5 + $0x68] sm:$0xff]  ;;  %v708_v28 = vld [vmem:[#allocation5 + $0x70] sm:$0x3f]  ;;  %s3710_s12 = sshll.u32 %s337_s25, 4  ;;  %s5885_s16 = scalar_lea.hbm %s5936_s6, %s3934_s28  ;;  %s5887_s12 = int_to_ptr.vmem [resolvable:$true] %s3710_s12 }
  0xc1   : > { %4188 = vmatmul.mubr.msk.f32.vlgmr.msra.gmra.mrb[0].mxu0 %vm349_vm0, %v344_v8  ;;  %4650 = vmatprep.subr.bf16.mxu0 %v4649_v7  ;;  %v4661_v25 = vpack.c.bf16 %v707_v24, %v706_v23  ;;  %v703_v27 = vld [vmem:[%s5615_s8 + $0x4] sm:$0xff]  ;;  %v704_v32 = vld [vmem:[%s5615_s8 + $0xc] sm:$0x7f]  ;;  %s3698_s11 = scalar_lea.sflag [#allocation4], %s5611_s13  ;;  %s5240_s9 = scalar_lea.vmem %s5887_s12, 16 }
  0xc2   : > { %4652 = vmatpush3.bf16.msra.mxu0 %v4649_v7  ;;  %4196 = vmatprep.mubr.msk.f32.mxu0 %vm349_vm0, %v338_v9  ;;  %v798_v29 = vld [vmem:[#allocation5 + $0x78] sm:$0xff]  ;;  %v799_v30 = vld [vmem:[#allocation5 + $0x80] sm:$0xff]  ;;  %v800_v34 = vld [vmem:[#allocation5 + $0x88] sm:$0x3f]  ;;  %p5241_p7 = scmp.ne.s32.totalorder %s5887_s12, %s5240_s9  ;;  %p5959_p4 = scmp.ne.s32.totalorder %s5947_s29, 0 }
  0xc3   : > { %4194 = vmatprep.subr.msk.mxu0 %vm356_vm1, %v342_v10  ;;  %v4665_v31 = vpack.c.bf16 %v799_v30, %v798_v29  ;;  %v795_v33 = vld [vmem:[%s5615_s8 + $0x5] sm:$0xff]  ;;  %v796_v38 = vld [vmem:[%s5615_s8 + $0xd] sm:$0x7f]  ;;  %s5331_s27 = smov [#allocation13]  }
  0xc4   : > { %v890_v35 = vld [vmem:[#allocation5 + $0x90] sm:$0xff]  ;;  %v891_v36 = vld [vmem:[#allocation5 + $0x98] sm:$0xff]  ;;  %v892_v40 = vld [vmem:[#allocation5 + $0xa0] sm:$0x3f]  ;;  %p5242_p12 = pnand %p5241_p7, %p5959_p4  ;;  %s5244_s19 = sshll.u32 %s5331_s27, 4  ;;  %s5245_s19 = int_to_ptr.vmem [resolvable:$false] %s5244_s19 }
  0xc5   : > { %v4669_v37 = vpack.c.bf16 %v891_v36, %v890_v35  ;;  %v887_v39 = vld [vmem:[%s5615_s8 + $0x6] sm:$0xff]  ;;  %v888_v44 = vld [vmem:[%s5615_s8 + $0xe] sm:$0x7f]  ;;  %s5246_s20 = scalar_lea.vmem %s5245_s19, 32  ;;  %p5247_p1 = scmp.lt.s32.totalorder %s5887_s12, %s5245_s19 }
  0xc6   : > { %4195 = vmatpush3.msk.msra.mxu0 %vm356_vm1, %v342_v10  ;;  %v982_v41 = vld [vmem:[#allocation5 + $0xa8] sm:$0xff]  ;;  %v983_v42 = vld [vmem:[#allocation5 + $0xb0] sm:$0xff]  ;;  %v984_v46 = vld [vmem:[#allocation5 + $0xb8] sm:$0x3f]  ;;  %p5243_p13 = pneg %p5242_p12  ;;  %p5248_p3 = scmp.lt.s32.totalorder %s5246_s20, %s5240_s9 }
  0xc7   : > { %4654 = vmatprep.subr.bf16.mxu0 %v4653_v13  ;;  %v4673_v43 = vpack.c.bf16 %v983_v42, %v982_v41  ;;  %v979_v45 = vld [vmem:[%s5615_s8 + $0x7] sm:$0xff]  ;;  %v980_v50 = vld [vmem:[%s5615_s8 + $0xf] sm:$0x7f] }
  0xc8   : > { %v1074_v47 = vld [vmem:[#allocation5 + $0xc0] sm:$0xff]  ;;  %v1075_v48 = vld [vmem:[#allocation5 + $0xc8] sm:$0xff]  ;;  %v1076_v52 = vld [vmem:[#allocation5 + $0xd0] sm:$0x3f]  ;;  %p5249_p2 = por %p5248_p3, %p5247_p1 }
  0xc9   : > { %4197 = vmatmul.mubr.msk.f32.vlgmr.msra.gmra.mrb[0].mxu0 %vm349_vm0, %v339_v14  ;;  %v4677_v49 = vpack.c.bf16 %v1075_v48, %v1074_v47  ;;  %v1071_v51 = vld [vmem:[%s5615_s8 + $0x8] sm:$0xff]  ;;  %v1167_v54 = vld [vmem:[#allocation5 + $0xe0] sm:$0xff]  ;;  %v1258_v59 = vld [vmem:[#allocation5 + $0xf0] sm:$0xff] }
  0xca   : > { %4656 = vmatpush3.bf16.msra.mxu0 %v4653_v13  ;;  %4205 = vmatprep.mubr.msk.f32.mxu0 %vm349_vm0, %v519_v15  ;;  %v1166_v53 = vld [vmem:[#allocation5 + $0xd8] sm:$0xff]  ;;  %v1168_v58 = vld [vmem:[#allocation5 + $0xe8] sm:$0x3f]  ;;  %v1260_v0 = vld [vmem:[#allocation5 + $0x100] sm:$0x3f]  ;;  %p5250_p8 = pnand %p5249_p2, %p5243_p13 }
  0xcb   : > { %4203 = vmatprep.subr.msk.mxu0 %vm356_vm1, %v524_v16  ;;  %v4681_v55 = vpack.c.bf16 %v1167_v54, %v1166_v53  ;;  %v1163_v57 = vld [vmem:[%s5615_s8 + $0x9] sm:$0xff]  ;;  %v1256_v4 = vld [vmem:[%s5615_s8 + $0x12] sm:$0x7f] }
  0xcc   : > { %v1259_v60 = vld [vmem:[#allocation5 + $0xf8] sm:$0xff]  ;;  %v1350_v1 = vld [vmem:[#allocation5 + $0x108] sm:$0xff]  ;;  %v1351_v2 = vld [vmem:[#allocation5 + $0x110] sm:$0xff] }
  0xcd   : > { %v4685_v61 = vpack.c.bf16 %v1259_v60, %v1258_v59  ;;  %v1255_v63 = vld [vmem:[%s5615_s8 + $0xa] sm:$0xff]  ;;  %v4689_v3 = vpack.c.bf16 %v1351_v2, %v1350_v1  ;;  %v1348_v10 = vld [vmem:[%s5615_s8 + $0x13] sm:$0x7f] }
  0xce   : > { %4204 = vmatpush3.msk.msra.mxu0 %vm356_vm1, %v524_v16  ;;  %v1347_v5 = vld [vmem:[%s5615_s8 + $0xb] sm:$0xff]  ;;  %v1440_v16 = vld [vmem:[%s5615_s8 + $0x14] sm:$0x7f] }
  0xcf   : > { %4658 = vmatprep.subr.bf16.mxu0 %v4657_v19  ;;  %v1352_v6 = vld [vmem:[#allocation5 + $0x118] sm:$0x3f]  ;;  %v1442_v7 = vld [vmem:[#allocation5 + $0x120] sm:$0xff]  ;;  %v1443_v8 = vld [vmem:[#allocation5 + $0x128] sm:$0xff] }
  0xd0   : > { %v4693_v9 = vpack.c.bf16 %v1443_v8, %v1442_v7  ;;  %v1439_v11 = vld [vmem:[%s5615_s8 + $0xc] sm:$0xff]  ;;  %v2175_v59 = vld [vmem:[%s5615_s8 + $0x14] sm:$0xff] }
  0xd1   : > { %4206 = vmatmul.mubr.msk.f32.vlgmr.msra.gmra.mrb[0].mxu0 %vm349_vm0, %v520_v20  ;;  %v1444_v12 = vld [vmem:[#allocation5 + $0x130] sm:$0x3f]  ;;  %v1534_v13 = vld [vmem:[#allocation5 + $0x138] sm:$0xff]  ;;  %v1535_v14 = vld [vmem:[#allocation5 + $0x140] sm:$0xff] }
  0xd2   : > { %4660 = vmatpush3.bf16.msra.mxu0 %v4657_v19  ;;  %4214 = vmatprep.mubr.msk.f32.mxu0 %vm349_vm0, %v611_v21  ;;  %v4697_v15 = vpack.c.bf16 %v1535_v14, %v1534_v13  ;;  %v1531_v17 = vld [vmem:[%s5615_s8 + $0xd] sm:$0xff]  ;;  %v2267_v1 = vld [vmem:[%s5615_s8 + $0x15] sm:$0xff] }
  0xd3   : > { %4212 = vmatprep.subr.msk.mxu0 %vm356_vm1, %v616_v22  ;;  %v1536_v18 = vld [vmem:[#allocation5 + $0x148] sm:$0x3f]  ;;  %v1626_v19 = vld [vmem:[#allocation5 + $0x150] sm:$0xff]  ;;  %v1627_v20 = vld [vmem:[#allocation5 + $0x158] sm:$0xff] }
  0xd4   : > { %v4701_v21 = vpack.c.bf16 %v1627_v20, %v1626_v19  ;;  %v1623_v23 = vld [vmem:[%s5615_s8 + $0xe] sm:$0xff]  ;;  %v1720_v30 = vld [vmem:[#allocation5 + $0x178] sm:$0x3f]  ;;  %v1904_v42 = vld [vmem:[#allocation5 + $0x1a8] sm:$0x3f] }
  0xd5   : > { %v1628_v24 = vld [vmem:[#allocation5 + $0x160] sm:$0x3f]  ;;  %v1812_v36 = vld [vmem:[#allocation5 + $0x190] sm:$0x3f]  ;;  %v2088_v54 = vld [vmem:[#allocation5 + $0x1d8] sm:$0x3f] }
  0xd6   : > { %4213 = vmatpush3.msk.msra.mxu0 %vm356_vm1, %v616_v22  ;;  %v1532_v22 = vld [vmem:[%s5615_s8 + $0x15] sm:$0x7f] }
  0xd7   : > { %4662 = vmatprep.subr.bf16.mxu0 %v4661_v25  ;;  %v1715_v29 = vld [vmem:[%s5615_s8 + $0xf] sm:$0xff]  ;;  %v2272_v2 = vld [vmem:[#allocation5 + $0x208] sm:$0x3f]  ;;  %v2456_v14 = vld [vmem:[#allocation5 + $0x238] sm:$0x3f] }
  0xd8   : > { %v1807_v35 = vld [vmem:[%s5615_s8 + $0x10] sm:$0xff]  ;;  %v2543_v19 = vld [vmem:[%s5615_s8 + $0x18] sm:$0xff] }
  0xd9   : > { %4215 = vmatmul.mubr.msk.f32.vlgmr.msra.gmra.mrb[0].mxu0 %vm349_vm0, %v612_v26  ;;  %v1719_v26 = vld [vmem:[#allocation5 + $0x170] sm:$0xff]  ;;  %v1996_v48 = vld [vmem:[#allocation5 + $0x1c0] sm:$0x3f] }
  0xda   : > { %4664 = vmatpush3.bf16.msra.mxu0 %v4661_v25  ;;  %4223 = vmatprep.mubr.msk.f32.mxu0 %vm349_vm0, %v703_v27  ;;  %v1718_v25 = vld [vmem:[#allocation5 + $0x168] sm:$0xff]  ;;  %v2180_v60 = vld [vmem:[#allocation5 + $0x1f0] sm:$0x3f]  ;;  %v2364_v8 = vld [vmem:[#allocation5 + $0x220] sm:$0x3f] }
  0xdb   : > { %4221 = vmatprep.subr.msk.mxu0 %vm356_vm1, %v708_v28  ;;  %v4705_v27 = vpack.c.bf16 %v1719_v26, %v1718_v25  ;;  %v1899_v41 = vld [vmem:[%s5615_s8 + $0x11] sm:$0xff]  ;;  %v2635_v25 = vld [vmem:[%s5615_s8 + $0x19] sm:$0xff] }
  0xdc   : > { %v1991_v47 = vld [vmem:[%s5615_s8 + $0x12] sm:$0xff] }
  0xdd   : > { %v2083_v53 = vld [vmem:[%s5615_s8 + $0x13] sm:$0xff] }
  0xde   : > { %4222 = vmatpush3.msk.msra.mxu0 %vm356_vm1, %v708_v28  ;;  %v1624_v28 = vld [vmem:[%s5615_s8 + $0x16] sm:$0x7f]  ;;  %v2548_v20 = vld [vmem:[#allocation5 + $0x250] sm:$0x3f] }
  0xdf   : > { %4666 = vmatprep.subr.bf16.mxu0 %v4665_v31  ;;  %v2359_v7 = vld [vmem:[%s5615_s8 + $0x16] sm:$0xff] }
  0xe0   : > { %v2451_v13 = vld [vmem:[%s5615_s8 + $0x17] sm:$0xff] }
  0xe1   : > { %4224 = vmatmul.mubr.msk.f32.vlgmr.msra.gmra.mrb[0].mxu0 %vm349_vm0, %v704_v32  ;;  %v1811_v32 = vld [vmem:[#allocation5 + $0x188] sm:$0xff] }
  0xe2   : > { %4668 = vmatpush3.bf16.msra.mxu0 %v4665_v31  ;;  %4232 = vmatprep.mubr.msk.f32.mxu0 %vm349_vm0, %v795_v33  ;;  %v1810_v31 = vld [vmem:[#allocation5 + $0x180] sm:$0xff]  ;;  %v2640_v26 = vld [vmem:[#allocation5 + $0x268] sm:$0x3f] }
  0xe3   : > { %4230 = vmatprep.subr.msk.mxu0 %vm356_vm1, %v800_v34  ;;  %v4709_v33 = vpack.c.bf16 %v1811_v32, %v1810_v31  ;;  %v2727_v31 = vld [vmem:[%s5615_s8 + $0x1a] sm:$0xff] }
  0xe4   : > { %v2732_v32 = vld [vmem:[#allocation5 + $0x280] sm:$0x3f] }
  0xe6   : > { %4231 = vmatpush3.msk.msra.mxu0 %vm356_vm1, %v800_v34  ;;  %v1716_v34 = vld [vmem:[%s5615_s8 + $0x17] sm:$0x7f] }
  0xe7   : > { %4670 = vmatprep.subr.bf16.mxu0 %v4669_v37 }
  0xe9   : > { %4233 = vmatmul.mubr.msk.f32.vlgmr.msra.gmra.mrb[0].mxu0 %vm349_vm0, %v796_v38  ;;  %v1903_v38 = vld [vmem:[#allocation5 + $0x1a0] sm:$0xff] }
  0xea   : > { %4672 = vmatpush3.bf16.msra.mxu0 %v4669_v37  ;;  %4241 = vmatprep.mubr.msk.f32.mxu0 %vm349_vm0, %v887_v39  ;;  %v1902_v37 = vld [vmem:[#allocation5 + $0x198] sm:$0xff] }
  0xeb   : > { %4239 = vmatprep.subr.msk.mxu0 %vm356_vm1, %v892_v40  ;;  %v4713_v39 = vpack.c.bf16 %v1903_v38, %v1902_v37  ;;  %v2819_v37 = vld [vmem:[%s5615_s8 + $0x1b] sm:$0xff] }
  0xec   : > { %v2824_v38 = vld [vmem:[#allocation5 + $0x298] sm:$0x3f] }
  0xee   : > { %4240 = vmatpush3.msk.msra.mxu0 %vm356_vm1, %v892_v40  ;;  %v1808_v40 = vld [vmem:[%s5615_s8 + $0x18] sm:$0x7f] }
  0xef   : > { %4674 = vmatprep.subr.bf16.mxu0 %v4673_v43 }
  0xf1   : > { %4242 = vmatmul.mubr.msk.f32.vlgmr.msra.gmra.mrb[0].mxu0 %vm349_vm0, %v888_v44  ;;  %v1995_v44 = vld [vmem:[#allocation5 + $0x1b8] sm:$0xff] }
  0xf2   : > { %4676 = vmatpush3.bf16.msra.mxu0 %v4673_v43  ;;  %4250 = vmatprep.mubr.msk.f32.mxu0 %vm349_vm0, %v979_v45  ;;  %v1994_v43 = vld [vmem:[#allocation5 + $0x1b0] sm:$0xff] }
  0xf3   : > { %4248 = vmatprep.subr.msk.mxu0 %vm356_vm1, %v984_v46  ;;  %v4717_v45 = vpack.c.bf16 %v1995_v44, %v1994_v43  ;;  %v2911_v43 = vld [vmem:[%s5615_s8 + $0x1c] sm:$0xff] }
  0xf4   : > { %v2916_v44 = vld [vmem:[#allocation5 + $0x2b0] sm:$0x3f] }
  0xf6   : > { %4249 = vmatpush3.msk.msra.mxu0 %vm356_vm1, %v984_v46  ;;  %v1900_v46 = vld [vmem:[%s5615_s8 + $0x19] sm:$0x7f] }
  0xf7   : > { %4678 = vmatprep.subr.bf16.mxu0 %v4677_v49 }
  0xf9   : > { %4251 = vmatmul.mubr.msk.f32.vlgmr.msra.gmra.mrb[0].mxu0 %vm349_vm0, %v980_v50  ;;  %v2087_v50 = vld [vmem:[#allocation5 + $0x1d0] sm:$0xff] }
  0xfa   : > { %4680 = vmatpush3.bf16.msra.mxu0 %v4677_v49  ;;  %4259 = vmatprep.mubr.msk.f32.mxu0 %vm349_vm0, %v1071_v51  ;;  %v2086_v49 = vld [vmem:[#allocation5 + $0x1c8] sm:$0xff] }
  0xfb   : > { %4257 = vmatprep.subr.msk.mxu0 %vm356_vm1, %v1076_v52  ;;  %v4721_v51 = vpack.c.bf16 %v2087_v50, %v2086_v49  ;;  %v3003_v49 = vld [vmem:[%s5615_s8 + $0x1d] sm:$0xff] }
  0xfc   : > { %v3008_v50 = vld [vmem:[#allocation5 + $0x2c8] sm:$0x3f] }
  0xfe   : > { %4258 = vmatpush3.msk.msra.mxu0 %vm356_vm1, %v1076_v52  ;;  %v1992_v52 = vld [vmem:[%s5615_s8 + $0x1a] sm:$0x7f] }
  0xff   : > { %4682 = vmatprep.subr.bf16.mxu0 %v4681_v55 }
 0x101   : > { %4260 = vmatmul.mubr.msk.f32.vlgmr.msra.gmra.mrb[0].mxu0 %vm349_vm0, %v1072_v56  ;;  %v2179_v56 = vld [vmem:[#allocation5 + $0x1e8] sm:$0xff] }
 0x102   : > { %4684 = vmatpush3.bf16.msra.mxu0 %v4681_v55  ;;  %4268 = vmatprep.mubr.msk.f32.mxu0 %vm349_vm0, %v1163_v57  ;;  %v2178_v55 = vld [vmem:[#allocation5 + $0x1e0] sm:$0xff] }
 0x103   : > { %4266 = vmatprep.subr.msk.mxu0 %vm356_vm1, %v1168_v58  ;;  %v4725_v57 = vpack.c.bf16 %v2179_v56, %v2178_v55  ;;  %v5328_v55 = vmov 0.0|0.0   ;;  %v3150_v56 = vld [vmem:[#allocation8 + $0x90] sm:$0xff] }
 0x104   : > { %4765 = vmatprep.subr.bf16.mxu1 %v5328_v55 }
 0x106   : > { %4267 = vmatpush3.msk.msra.mxu0 %vm356_vm1, %v1168_v58  ;;  %v2084_v58 = vld [vmem:[%s5615_s8 + $0x1b] sm:$0x7f] }
 0x107   : > { %4686 = vmatprep.subr.bf16.mxu0 %v4685_v61 }
 0x109   : > { %4269 = vmatmul.mubr.msk.f32.vlgmr.msra.gmra.mrb[0].mxu0 %vm349_vm0, %v1164_v62  ;;  %v2271_v62 = vld [vmem:[#allocation5 + $0x200] sm:$0xff] }
 0x10a   : > { %4688 = vmatpush3.bf16.msra.mxu0 %v4685_v61  ;;  %4277 = vmatprep.mubr.msk.f32.mxu0 %vm349_vm0, %v1255_v63  ;;  %v2270_v61 = vld [vmem:[#allocation5 + $0x1f8] sm:$0xff] }
 0x10b   : > { %4275 = vmatprep.subr.msk.mxu0 %vm356_vm1, %v1260_v0  ;;  %v4729_v63 = vpack.c.bf16 %v2271_v62, %v2270_v61  ;;  %v3154_v62 = vld [vmem:[#allocation8 + $0xb0] sm:$0xff] }
 0x10e   : > { %4276 = vmatpush3.msk.msra.mxu0 %vm356_vm1, %v1260_v0  ;;  %v2176_v0 = vld [vmem:[%s5615_s8 + $0x1c] sm:$0x7f] }
 0x10f   : > { %4690 = vmatprep.subr.bf16.mxu0 %v4689_v3 }
 0x111   : > { %4278 = vmatmul.mubr.msk.f32.vlgmr.msra.gmra.mrb[0].mxu0 %vm349_vm0, %v1256_v4  ;;  %v2363_v4 = vld [vmem:[#allocation5 + $0x218] sm:$0xff] }
 0x112   : > { %4692 = vmatpush3.bf16.msra.mxu0 %v4689_v3  ;;  %4286 = vmatprep.mubr.msk.f32.mxu0 %vm349_vm0, %v1347_v5  ;;  %v2362_v3 = vld [vmem:[#allocation5 + $0x210] sm:$0xff] }
 0x113   : > { %4284 = vmatprep.subr.msk.mxu0 %vm356_vm1, %v1352_v6  ;;  %v4733_v5 = vpack.c.bf16 %v2363_v4, %v2362_v3  ;;  %v3158_v4 = vld [vmem:[#allocation8 + $0xd0] sm:$0xff] }
 0x116   : > { %4285 = vmatpush3.msk.msra.mxu0 %vm356_vm1, %v1352_v6  ;;  %v2268_v6 = vld [vmem:[%s5615_s8 + $0x1d] sm:$0x7f] }
 0x117   : > { %4694 = vmatprep.subr.bf16.mxu0 %v4693_v9 }
 0x119   : > { %4287 = vmatmul.mubr.msk.f32.vlgmr.msra.gmra.mrb[0].mxu0 %vm349_vm0, %v1348_v10  ;;  %v2455_v10 = vld [vmem:[#allocation5 + $0x230] sm:$0xff] }
 0x11a   : > { %4696 = vmatpush3.bf16.msra.mxu0 %v4693_v9  ;;  %4295 = vmatprep.mubr.msk.f32.mxu0 %vm349_vm0, %v1439_v11  ;;  %v2454_v9 = vld [vmem:[#allocation5 + $0x228] sm:$0xff] }
 0x11b   : > { %4293 = vmatprep.subr.msk.mxu0 %vm356_vm1, %v1444_v12  ;;  %v4737_v11 = vpack.c.bf16 %v2455_v10, %v2454_v9  ;;  %v3162_v10 = vld [vmem:[#allocation8 + $0xf0] sm:$0xff] }
 0x11e   : > { %4294 = vmatpush3.msk.msra.mxu0 %vm356_vm1, %v1444_v12  ;;  %v2360_v12 = vld [vmem:[%s5615_s8 + $0x1e] sm:$0x7f] }
 0x11f   : > { %4698 = vmatprep.subr.bf16.mxu0 %v4697_v15 }
 0x121   : > { %4296 = vmatmul.mubr.msk.f32.vlgmr.msra.gmra.mrb[0].mxu0 %vm349_vm0, %v1440_v16  ;;  %v2547_v16 = vld [vmem:[#allocation5 + $0x248] sm:$0xff] }
 0x122   : > { %4700 = vmatpush3.bf16.msra.mxu0 %v4697_v15  ;;  %4304 = vmatprep.mubr.msk.f32.mxu0 %vm349_vm0, %v1531_v17  ;;  %v2546_v15 = vld [vmem:[#allocation5 + $0x240] sm:$0xff] }
 0x123   : > { %4302 = vmatprep.subr.msk.mxu0 %vm356_vm1, %v1536_v18  ;;  %v4741_v17 = vpack.c.bf16 %v2547_v16, %v2546_v15 }
 0x126   : > { %4303 = vmatpush3.msk.msra.mxu0 %vm356_vm1, %v1536_v18  ;;  %v2452_v18 = vld [vmem:[%s5615_s8 + $0x1f] sm:$0x7f] }
 0x127   : > { %4702 = vmatprep.subr.bf16.mxu0 %v4701_v21 }
 0x129   : > { %4305 = vmatmul.mubr.msk.f32.vlgmr.msra.gmra.mrb[0].mxu0 %vm349_vm0, %v1532_v22  ;;  %v2639_v22 = vld [vmem:[#allocation5 + $0x260] sm:$0xff] }
 0x12a   : > { %4704 = vmatpush3.bf16.msra.mxu0 %v4701_v21  ;;  %4313 = vmatprep.mubr.msk.f32.mxu0 %vm349_vm0, %v1623_v23  ;;  %v2638_v21 = vld [vmem:[#allocation5 + $0x258] sm:$0xff] }
 0x12b   : > { %4311 = vmatprep.subr.msk.mxu0 %vm356_vm1, %v1628_v24  ;;  %v4745_v23 = vpack.c.bf16 %v2639_v22, %v2638_v21 }
 0x12e   : > { %4312 = vmatpush3.msk.msra.mxu0 %vm356_vm1, %v1628_v24  ;;  %v2544_v24 = vld [vmem:[%s5615_s8 + $0x20] sm:$0x7f] }
 0x12f   : > { %4706 = vmatprep.subr.bf16.mxu0 %v4705_v27 }
 0x131   : > { %4314 = vmatmul.mubr.msk.f32.vlgmr.msra.gmra.mrb[0].mxu0 %vm349_vm0, %v1624_v28  ;;  %v2731_v28 = vld [vmem:[#allocation5 + $0x278] sm:$0xff] }
 0x132   : > { %4708 = vmatpush3.bf16.msra.mxu0 %v4705_v27  ;;  %4322 = vmatprep.mubr.msk.f32.mxu0 %vm349_vm0, %v1715_v29  ;;  %v2730_v27 = vld [vmem:[#allocation5 + $0x270] sm:$0xff] }
 0x133   : > { %4320 = vmatprep.subr.msk.mxu0 %vm356_vm1, %v1720_v30  ;;  %v4749_v29 = vpack.c.bf16 %v2731_v28, %v2730_v27 }
 0x136   : > { %4321 = vmatpush3.msk.msra.mxu0 %vm356_vm1, %v1720_v30  ;;  %v2636_v30 = vld [vmem:[%s5615_s8 + $0x21] sm:$0x7f] }
 0x137   : > { %4710 = vmatprep.subr.bf16.mxu0 %v4709_v33 }
 0x139   : > { %4323 = vmatmul.mubr.msk.f32.vlgmr.msra.gmra.mrb[0].mxu0 %vm349_vm0, %v1716_v34  ;;  %v2823_v34 = vld [vmem:[#allocation5 + $0x290] sm:$0xff] }
 0x13a   : > { %4712 = vmatpush3.bf16.msra.mxu0 %v4709_v33  ;;  %4331 = vmatprep.mubr.msk.f32.mxu0 %vm349_vm0, %v1807_v35  ;;  %v2822_v33 = vld [vmem:[#allocation5 + $0x288] sm:$0xff] }
 0x13b   : > { %4329 = vmatprep.subr.msk.mxu0 %vm356_vm1, %v1812_v36  ;;  %v4753_v35 = vpack.c.bf16 %v2823_v34, %v2822_v33 }
 0x13e   : > { %4330 = vmatpush3.msk.msra.mxu0 %vm356_vm1, %v1812_v36  ;;  %v2728_v36 = vld [vmem:[%s5615_s8 + $0x22] sm:$0x7f] }
 0x13f   : > { %4714 = vmatprep.subr.bf16.mxu0 %v4713_v39 }
 0x141   : > { %4332 = vmatmul.mubr.msk.f32.vlgmr.msra.gmra.mrb[0].mxu0 %vm349_vm0, %v1808_v40  ;;  %v2915_v40 = vld [vmem:[#allocation5 + $0x2a8] sm:$0xff] }
 0x142   : > { %4716 = vmatpush3.bf16.msra.mxu0 %v4713_v39  ;;  %4340 = vmatprep.mubr.msk.f32.mxu0 %vm349_vm0, %v1899_v41  ;;  %v2914_v39 = vld [vmem:[#allocation5 + $0x2a0] sm:$0xff] }
 0x143   : > { %4338 = vmatprep.subr.msk.mxu0 %vm356_vm1, %v1904_v42  ;;  %v4757_v41 = vpack.c.bf16 %v2915_v40, %v2914_v39 }
 0x146   : > { %4339 = vmatpush3.msk.msra.mxu0 %vm356_vm1, %v1904_v42  ;;  %v2820_v42 = vld [vmem:[%s5615_s8 + $0x23] sm:$0x7f] }
 0x147   : > { %4718 = vmatprep.subr.bf16.mxu0 %v4717_v45 }
 0x149   : > { %4341 = vmatmul.mubr.msk.f32.vlgmr.msra.gmra.mrb[0].mxu0 %vm349_vm0, %v1900_v46  ;;  %v3007_v46 = vld [vmem:[#allocation5 + $0x2c0] sm:$0xff] }
 0x14a   : > { %4720 = vmatpush3.bf16.msra.mxu0 %v4717_v45  ;;  %4349 = vmatprep.mubr.msk.f32.mxu0 %vm349_vm0, %v1991_v47  ;;  %v3006_v45 = vld [vmem:[#allocation5 + $0x2b8] sm:$0xff] }
 0x14b   : > { %4347 = vmatprep.subr.msk.mxu0 %vm356_vm1, %v1996_v48  ;;  %v4761_v47 = vpack.c.bf16 %v3007_v46, %v3006_v45  ;;  %v3128_v45 = vld [vmem:[#allocation8 + $0x20] sm:$0xff]  ;;  %v3129_v46 = vld [vmem:[#allocation8 + $0x28] sm:$0xff] }
 0x14e   : > { %4348 = vmatpush3.msk.msra.mxu0 %vm356_vm1, %v1996_v48  ;;  %v2912_v48 = vld [vmem:[%s5615_s8 + $0x24] sm:$0x7f] }
 0x14f   : > { %4722 = vmatprep.subr.bf16.mxu0 %v4721_v51 }
 0x151   : > { %4350 = vmatmul.mubr.msk.f32.vlgmr.msra.gmra.mrb[0].mxu0 %vm349_vm0, %v1992_v52  ;;  %v3148_v52 = vld [vmem:[#allocation8 + $0x80] sm:$0xff] }
 0x152   : > { %4724 = vmatpush3.bf16.msra.mxu0 %v4721_v51  ;;  %4358 = vmatprep.mubr.msk.f32.mxu0 %vm349_vm0, %v2083_v53  ;;  %v3004_v51 = vld [vmem:[%s5615_s8 + $0x25] sm:$0x7f] }
 0x153   : > { %4356 = vmatprep.subr.msk.mxu0 %vm356_vm1, %v2088_v54  ;;  %v3149_v53 = vld [vmem:[#allocation8 + $0x88] sm:$0xff] }
 0x156   : > { %4357 = vmatpush3.msk.msra.mxu0 %vm356_vm1, %v2088_v54  ;;  %v4766_v54 = vpack.c.bf16 %v3149_v53, %v3148_v52  ;;  %v3132_v53 = vld [vmem:[#allocation8 + $0x40] sm:$0xff] }
 0x157   : > { %4726 = vmatprep.subr.bf16.mxu0 %v4725_v57 }
 0x158   : > { %4767 = vmatpush3.bf16.msra.mxu1 %v4766_v54  ;;  %v3133_v54 = vld [vmem:[#allocation8 + $0x48] sm:$0xff] }
 0x159   : > { %4359 = vmatmul.mubr.msk.f32.vlgmr.msra.gmra.mrb[0].mxu0 %vm349_vm0, %v2084_v58  ;;  %4768 = vmatprep.subr.bf16.mxu1 %v5328_v55 }
 0x15a   : > { %4728 = vmatpush3.bf16.msra.mxu0 %v4725_v57  ;;  %4367 = vmatprep.mubr.msk.f32.mxu0 %vm349_vm0, %v2175_v59  ;;  %v3151_v57 = vld [vmem:[#allocation8 + $0x98] sm:$0xff]  ;;  %v3152_v59 = vld [vmem:[#allocation8 + $0xa0] sm:$0xff] }
 0x15b   : > { %4365 = vmatprep.subr.msk.mxu0 %vm356_vm1, %v2180_v60  ;;  %v4769_v58 = vpack.c.bf16 %v3151_v57, %v3150_v56  ;;  %v4802_v56 = vpack.c.bf16 %v3133_v54, %v3132_v53  ;;  %v3418_v53 = vld [vmem:[#allocation8 + $0x1c0] sm:$0xff]  ;;  %v3419_v54 = vld [vmem:[#allocation8 + $0x1c8] sm:$0xff] }
 0x15d   : > { %4770 = vmatpush3.bf16.msra.mxu1 %v4769_v58  ;;  %v3134_v58 = vld [vmem:[#allocation8 + $0x50] sm:$0xff] }
 0x15e   : > { %4366 = vmatpush3.msk.msra.mxu0 %vm356_vm1, %v2180_v60  ;;  %4771 = vmatprep.subr.bf16.mxu1 %v5328_v55  ;;  %v3153_v60 = vld [vmem:[#allocation8 + $0xa8] sm:$0xff] }
 0x15f   : > { %4730 = vmatprep.subr.bf16.mxu0 %v4729_v63  ;;  %v4772_v61 = vpack.c.bf16 %v3153_v60, %v3152_v59  ;;  %v3135_v59 = vld [vmem:[#allocation8 + $0x58] sm:$0xff] }
 0x160   : > { %v4805_v60 = vpack.c.bf16 %v3135_v59, %v3134_v58  ;;  %v3420_v58 = vld [vmem:[#allocation8 + $0x1d0] sm:$0xff]  ;;  %v3421_v59 = vld [vmem:[#allocation8 + $0x1d8] sm:$0xff] }
 0x161   : > { %4368 = vmatmul.mubr.msk.f32.vlgmr.msra.gmra.mrb[0].mxu0 %vm349_vm0, %v2176_v0  ;;  %4773 = vmatpush3.bf16.msra.mxu1 %v4772_v61 }
 0x162   : > { %4732 = vmatpush3.bf16.msra.mxu0 %v4729_v63  ;;  %4376 = vmatprep.mubr.msk.f32.mxu0 %vm349_vm0, %v2267_v1  ;;  %v3155_v63 = vld [vmem:[#allocation8 + $0xb8] sm:$0xff]  ;;  %v3156_v1 = vld [vmem:[#allocation8 + $0xc0] sm:$0xff] }
 0x163   : > { %4374 = vmatprep.subr.msk.mxu0 %vm356_vm1, %v2272_v2  ;;  %4774 = vmatprep.subr.bf16.mxu1 %v5328_v55  ;;  %v4775_v0 = vpack.c.bf16 %v3155_v63, %v3154_v62  ;;  %v3136_v62 = vld [vmem:[#allocation8 + $0x60] sm:$0xff]  ;;  %v3137_v63 = vld [vmem:[#allocation8 + $0x68] sm:$0xff] }
 0x165   : > { %4776 = vmatpush3.bf16.msra.mxu1 %v4775_v0  ;;  %v4808_v0 = vpack.c.bf16 %v3137_v63, %v3136_v62  ;;  %v3422_v62 = vld [vmem:[#allocation8 + $0x1e0] sm:$0xff]  ;;  %v3423_v63 = vld [vmem:[#allocation8 + $0x1e8] sm:$0xff] }
 0x166   : > { %4375 = vmatpush3.msk.msra.mxu0 %vm356_vm1, %v2272_v2  ;;  %4777 = vmatprep.subr.bf16.mxu1 %v5328_v55  ;;  %v3157_v2 = vld [vmem:[#allocation8 + $0xc8] sm:$0xff] }
 0x167   : > { %4734 = vmatprep.subr.bf16.mxu0 %v4733_v5  ;;  %v4778_v3 = vpack.c.bf16 %v3157_v2, %v3156_v1  ;;  %v3138_v1 = vld [vmem:[#allocation8 + $0x70] sm:$0xff]  ;;  %v3139_v2 = vld [vmem:[#allocation8 + $0x78] sm:$0xff] }
 0x169   : > { %4377 = vmatmul.mubr.msk.f32.vlgmr.msra.gmra.mrb[0].mxu0 %vm349_vm0, %v2268_v6  ;;  %4779 = vmatpush3.bf16.msra.mxu1 %v4778_v3 }
 0x16a   : > { %4736 = vmatpush3.bf16.msra.mxu0 %v4733_v5  ;;  %4385 = vmatprep.mubr.msk.f32.mxu0 %vm349_vm0, %v2359_v7  ;;  %v3159_v5 = vld [vmem:[#allocation8 + $0xd8] sm:$0xff]  ;;  %v3160_v7 = vld [vmem:[#allocation8 + $0xe0] sm:$0xff] }
 0x16b   : > { %4383 = vmatprep.subr.msk.mxu0 %vm356_vm1, %v2364_v8  ;;  %4780 = vmatprep.subr.bf16.mxu1 %v5328_v55  ;;  %v4781_v6 = vpack.c.bf16 %v3159_v5, %v3158_v4  ;;  %v4811_v4 = vpack.c.bf16 %v3139_v2, %v3138_v1  ;;  %v3424_v1 = vld [vmem:[#allocation8 + $0x1f0] sm:$0xff]  ;;  %v3425_v2 = vld [vmem:[#allocation8 + $0x1f8] sm:$0xff] }
 0x16d   : > { %4782 = vmatpush3.bf16.msra.mxu1 %v4781_v6  ;;  %v3315_v6 = vld [vmem:[#allocation8 + $0x100] sm:$0xff] }
 0x16e   : > { %4384 = vmatpush3.msk.msra.mxu0 %vm356_vm1, %v2364_v8  ;;  %4783 = vmatprep.subr.bf16.mxu1 %v5328_v55  ;;  %v3161_v8 = vld [vmem:[#allocation8 + $0xe8] sm:$0xff] }
 0x16f   : > { %4738 = vmatprep.subr.bf16.mxu0 %v4737_v11  ;;  %v4784_v9 = vpack.c.bf16 %v3161_v8, %v3160_v7  ;;  %v3316_v7 = vld [vmem:[#allocation8 + $0x108] sm:$0xff] }
 0x170   : > { %v4814_v8 = vpack.c.bf16 %v3316_v7, %v3315_v6  ;;  %v3505_v6 = vld [vmem:[#allocation8 + $0x200] sm:$0xff]  ;;  %v3506_v7 = vld [vmem:[#allocation8 + $0x208] sm:$0xff] }
 0x171   : > { %4386 = vmatmul.mubr.msk.f32.vlgmr.msra.gmra.mrb[0].mxu0 %vm349_vm0, %v2360_v12  ;;  %4785 = vmatpush3.bf16.msra.mxu1 %v4784_v9 }
 0x172   : > { %4740 = vmatpush3.bf16.msra.mxu0 %v4737_v11  ;;  %4394 = vmatprep.mubr.msk.f32.mxu0 %vm349_vm0, %v2451_v13  ;;  %v3163_v11 = vld [vmem:[#allocation8 + $0xf8] sm:$0xff]  ;;  %v5330_v13 = vmov 0.0  }
 0x173   : > { %4392 = vmatprep.subr.msk.mxu0 %vm356_vm1, %v2456_v14  ;;  %4786 = vmatprep.subr.bf16.mxu1 %v5328_v55  ;;  %v4787_v12 = vpack.c.bf16 %v3163_v11, %v3162_v10  ;;  %v3317_v10 = vld [vmem:[#allocation8 + $0x110] sm:$0xff]  ;;  %v3318_v11 = vld [vmem:[#allocation8 + $0x118] sm:$0xff] }
 0x174   : > { %4483 = vmatprep.mubr.msk.f32.mxu1 %vm5329_vm2, %v5330_v13 }
 0x175   : > { %4788 = vmatpush3.bf16.msra.mxu1 %v4787_v12  ;;  %v4817_v12 = vpack.c.bf16 %v3318_v11, %v3317_v10  ;;  %v3507_v10 = vld [vmem:[#allocation8 + $0x210] sm:$0xff]  ;;  %v3508_v11 = vld [vmem:[#allocation8 + $0x218] sm:$0xff] }
 0x176   : > { %4393 = vmatpush3.msk.msra.mxu0 %vm356_vm1, %v2456_v14  ;;  %4789 = vmatprep.subr.bf16.mxu1 %v5328_v55  ;;  %v3929_v14 = vld [vmem:[#allocation7] ss:$0 sm:$0xff] }
 0x177   : > { %4742 = vmatprep.subr.bf16.mxu0 %v4741_v17 }
 0x179   : > { %4395 = vmatmul.mubr.msk.f32.vlgmr.msra.gmra.mrb[0].mxu0 %vm349_vm0, %v2452_v18 }
 0x17a   : > { %4744 = vmatpush3.bf16.msra.mxu0 %v4741_v17  ;;  %4403 = vmatprep.mubr.msk.f32.mxu0 %vm349_vm0, %v2543_v19 }
 0x17b   : > { %4401 = vmatprep.subr.msk.mxu0 %vm356_vm1, %v2548_v20 }
 0x17e   : > { %4402 = vmatpush3.msk.msra.mxu0 %vm356_vm1, %v2548_v20 }
 0x17f   : > { %4746 = vmatprep.subr.bf16.mxu0 %v4745_v23 }
 0x181   : > { %4404 = vmatmul.mubr.msk.f32.vlgmr.msra.gmra.mrb[0].mxu0 %vm349_vm0, %v2544_v24 }
 0x182   : > { %4748 = vmatpush3.bf16.msra.mxu0 %v4745_v23  ;;  %4412 = vmatprep.mubr.msk.f32.mxu0 %vm349_vm0, %v2635_v25 }
 0x183   : > { %4410 = vmatprep.subr.msk.mxu0 %vm356_vm1, %v2640_v26 }
 0x186   : > { %4411 = vmatpush3.msk.msra.mxu0 %vm356_vm1, %v2640_v26 }
 0x187   : > { %4750 = vmatprep.subr.bf16.mxu0 %v4749_v29 }
 0x189   : > { %4413 = vmatmul.mubr.msk.f32.vlgmr.msra.gmra.mrb[0].mxu0 %vm349_vm0, %v2636_v30 }
 0x18a   : > { %4752 = vmatpush3.bf16.msra.mxu0 %v4749_v29  ;;  %4421 = vmatprep.mubr.msk.f32.mxu0 %vm349_vm0, %v2727_v31 }
 0x18b   : > { %4419 = vmatprep.subr.msk.mxu0 %vm356_vm1, %v2732_v32 }
 0x18e   : > { %4420 = vmatpush3.msk.msra.mxu0 %vm356_vm1, %v2732_v32 }
 0x18f   : > { %4754 = vmatprep.subr.bf16.mxu0 %v4753_v35 }
 0x191   : > { %4422 = vmatmul.mubr.msk.f32.vlgmr.msra.gmra.mrb[0].mxu0 %vm349_vm0, %v2728_v36 }
 0x192   : > { %4756 = vmatpush3.bf16.msra.mxu0 %v4753_v35  ;;  %4430 = vmatprep.mubr.msk.f32.mxu0 %vm349_vm0, %v2819_v37  ;;  %v3124_v37 = vld [vmem:[#allocation8] sm:$0xff] }
 0x193   : > { %4428 = vmatprep.subr.msk.mxu0 %vm356_vm1, %v2824_v38 }
 0x196   : > { %4429 = vmatpush3.msk.msra.mxu0 %vm356_vm1, %v2824_v38  ;;  %v3125_v38 = vld [vmem:[#allocation8 + $0x8] sm:$0xff] }
 0x197   : > { %4758 = vmatprep.subr.bf16.mxu0 %v4757_v41  ;;  %v4790_v40 = vpack.c.bf16 %v3125_v38, %v3124_v37  ;;  %v3410_v38 = vld [vmem:[#allocation8 + $0x180] sm:$0xff] }
 0x199   : > { %4431 = vmatmul.mubr.msk.f32.vlgmr.msra.gmra.mrb[0].mxu0 %vm349_vm0, %v2820_v42  ;;  %v3126_v42 = vld [vmem:[#allocation8 + $0x10] sm:$0xff] }
 0x19a   : > { %4760 = vmatpush3.bf16.msra.mxu0 %v4757_v41  ;;  %4439 = vmatprep.mubr.msk.f32.mxu0 %vm349_vm0, %v2911_v43  ;;  %v3127_v43 = vld [vmem:[#allocation8 + $0x18] sm:$0xff] }
 0x19b   : > { %4437 = vmatprep.subr.msk.mxu0 %vm356_vm1, %v2916_v44 }
 0x19e   : > { %4438 = vmatpush3.msk.msra.mxu0 %vm356_vm1, %v2916_v44  ;;  %v4793_v44 = vpack.c.bf16 %v3127_v43, %v3126_v42  ;;  %v3412_v42 = vld [vmem:[#allocation8 + $0x190] sm:$0xff]  ;;  %v3413_v43 = vld [vmem:[#allocation8 + $0x198] sm:$0xff] }
 0x19f   : > { %4762 = vmatprep.subr.bf16.mxu0 %v4761_v47 }
 0x1a1   : > { %4440 = vmatmul.mubr.msk.f32.vlgmr.msra.gmra.mrb[0].mxu0 %vm349_vm0, %v2912_v48  ;;  %v3130_v48 = vld [vmem:[#allocation8 + $0x30] sm:$0xff] }
 0x1a2   : > { %4764 = vmatpush3.bf16.msra.mxu0 %v4761_v47  ;;  %4448 = vmatprep.mubr.msk.f32.mxu0 %vm349_vm0, %v3003_v49  ;;  %v4796_v47 = vpack.c.bf16 %v3129_v46, %v3128_v45  ;;  %v3131_v49 = vld [vmem:[#allocation8 + $0x38] sm:$0xff]  ;;  %v3414_v45 = vld [vmem:[#allocation8 + $0x1a0] sm:$0xff]  ;;  %v3415_v46 = vld [vmem:[#allocation8 + $0x1a8] sm:$0xff] }
 0x1a3   : > { %4446 = vmatprep.subr.msk.mxu0 %vm356_vm1, %v3008_v50 }
 0x1a6   : > { %4447 = vmatpush3.msk.msra.mxu0 %vm356_vm1, %v3008_v50 }
 0x1a9   : > { %4449 = vmatmul.mubr.msk.f32.vlgmr.msra.gmra.mrb[0].mxu0 %vm349_vm0, %v3004_v51  ;;  %v4799_v51 = vpack.c.bf16 %v3131_v49, %v3130_v48  ;;  %v3416_v48 = vld [vmem:[#allocation8 + $0x1b0] sm:$0xff]  ;;  %v3417_v49 = vld [vmem:[#allocation8 + $0x1b8] sm:$0xff] }
 0x27c   : > { %v4450_v15 = vpop.f32.mrb[0].mxu0 }
 0x27d   : > { %v3103_v16 = vadd.f32 %v4450_v15, %v3929_v14  ;;  %v3084_v17 = vpop.f32.mrb[1].mxu0  ;;  %v3320_v15 = vld [vmem:[#allocation8 + $0x128] sm:$0xff] }
 0x27e   : > { %v3102_v18 = vadd.f32 %v3929_v14, %v3084_v17  ;;  %v3319_v14 = vld [vmem:[#allocation8 + $0x120] sm:$0xff]  ;;  %v3321_v17 = vld [vmem:[#allocation8 + $0x130] sm:$0xff] }
 0x27f   : > { %v3107_v19 = vmin.f32 %v3103_v16, 0.0  ;;  %vm3105_vm4 = vcmp.gt.f32.partialorder %v3103_v16, 0.0 }
 0x280   : > { %v3106_v20 = vmin.f32 %v3102_v18, 0.0  ;;  %vm3104_vm6 = vcmp.gt.f32.partialorder %v3102_v18, 0.0 }
 0x281   : > { %v3110_v21 = vmul.f32 1.442695, %v3107_v19 }
 0x282   : > { %v3108_v22 = vmul.f32 1.442695, %v3106_v20 }
 0x283   : > { %5060 = vpow2.f32 %v3110_v21  ;;  %v3323_v21 = vld [vmem:[#allocation8 + $0x140] sm:$0xff] }
 0x284   : > { %5062 = vpow2.f32 %v3108_v22  ;;  %v3324_v22 = vld [vmem:[#allocation8 + $0x148] sm:$0xff] }
 0x28d   : > { %v5061_v23 = vpop.eup %5060 }
 0x28e   : > { %v5063_v24 = vpop.eup %5062  ;;  %v3931_v25 = vadd.f32 -1.0, %v5061_v23  ;;  %v4826_v23 = vpack.c.bf16 %v3324_v22, %v3323_v21  ;;  %v3513_v22 = vld [vmem:[#allocation8 + $0x240] sm:$0xff] }
 0x28f   : > { %v3930_v26 = vadd.f32 -1.0, %v5063_v24 }
 0x290   : > { %v5824_v27 = vsel %vm3105_vm4, %v3103_v16, %v3931_v25  ;;  %v4820_v16 = vpack.c.bf16 %v3320_v15, %v3319_v14  ;;  %v3325_v25 = vld [vmem:[#allocation8 + $0x150] sm:$0xff]  ;;  %v3509_v14 = vld [vmem:[#allocation8 + $0x220] sm:$0xff]  ;;  %v3510_v15 = vld [vmem:[#allocation8 + $0x228] sm:$0xff] }
 0x291   : > { %v3307_v28 = vsel %vm3306_vm3, %v5824_v27, -inf  ;;  %v3114_v29 = vsel %vm3104_vm6, %v3102_v18, %v3930_v26  ;;  %v3322_v18 = vld [vmem:[#allocation8 + $0x138] sm:$0xff] }
 0x292   : > { %v3141_v30 = vsel %vm3140_vm5, %v3114_v29, -inf  ;;  %v3305_v32 = vsel %vm3304_vm7, %v3114_v29, -inf  ;;  %v3117_v50 = vsel %vm3116_vm8, %v3114_v29, -inf  ;;  %v4823_v19 = vpack.c.bf16 %v3322_v18, %v3321_v17  ;;  %v3326_v26 = vld [vmem:[#allocation8 + $0x158] sm:$0xff]  ;;  %v3327_v29 = vld [vmem:[#allocation8 + $0x160] sm:$0xff]  ;;  %v3511_v17 = vld [vmem:[#allocation8 + $0x230] sm:$0xff] }
 0x293   : > { %v3142_v31 = vrot.slane %v3141_v30, 4  ;;  %v5827_v33 = vmax.f32 %v3305_v32, %v3307_v28  ;;  %v3118_v52 = vrot.slane %v3117_v50, 4  ;;  %v4829_v28 = vpack.c.bf16 %v3326_v26, %v3325_v25  ;;  %v3512_v18 = vld [vmem:[#allocation8 + $0x238] sm:$0xff]  ;;  %v3515_v26 = vld [vmem:[#allocation8 + $0x250] sm:$0xff] }
 0x295   : > { %v3143_v34 = vmax.f32 %v3141_v30, %v3142_v31  ;;  %v3119_v57 = vmax.f32 %v3117_v50, %v3118_v52  ;;  %v3309_v20 = vrot.slane %v5827_v33, 4  ;;  %v3328_v30 = vld [vmem:[#allocation8 + $0x168] sm:$0xff]  ;;  %v3403_v50 = vsel %vm3402_vm9, %v5824_v27, -inf }
 0x296   : > { %v4832_v32 = vpack.c.bf16 %v3328_v30, %v3327_v29  ;;  %v3404_v52 = vrot.slane %v3403_v50, 4 }
 0x297   : > { %v3144_v35 = vrot.slane %v3143_v34, 2  ;;  %v3120_v61 = vrot.slane %v3119_v57, 2  ;;  %v3310_v24 = vmax.f32 %v5827_v33, %v3309_v20  ;;  %v4871_v20 = vpack.c.bf16 %v3512_v18, %v3511_v17 }
 0x299   : > { %v3145_v36 = vmax.f32 %v3143_v34, %v3144_v35  ;;  %v3121_v3 = vmax.f32 %v3119_v57, %v3120_v61  ;;  %v3311_v31 = vrot.slane %v3310_v24, 2  ;;  %v3329_v34 = vld [vmem:[#allocation8 + $0x170] sm:$0xff]  ;;  %v3330_v35 = vld [vmem:[#allocation8 + $0x178] sm:$0xff]  ;;  %v3405_v57 = vmax.f32 %v3403_v50, %v3404_v52 }
 0x29a   : > { %v4835_v33 = vpack.c.bf16 %v3330_v35, %v3329_v34  ;;  %v3519_v34 = vld [vmem:[#allocation8 + $0x270] sm:$0xff]  ;;  %v3520_v35 = vld [vmem:[#allocation8 + $0x278] sm:$0xff] }
 0x29b   : > { %v3146_v39 = vrot.slane %v3145_v36, 1  ;;  %v3122_v5 = vrot.slane %v3121_v3, 1  ;;  %v3406_v61 = vrot.slane %v3405_v57, 2  ;;  %v3606_v50 = vld [vmem:[#allocation11 + $0x30] sm:$0xff] }
 0x29d   : > { %v3147_v41 = vmax.f32 %v3145_v36, %v3146_v39  ;;  %v3123_v9 = vmax.f32 %v3121_v3, %v3122_v5  ;;  %v3312_v36 = vmax.f32 %v3310_v24, %v3311_v31  ;;  %v3411_v39 = vld [vmem:[#allocation8 + $0x188] sm:$0xff]  ;;  %v3407_v3 = vmax.f32 %v3405_v57, %v3406_v61 }
 0x29e   : > { %v3518_v31 = vld [vmem:[#allocation8 + $0x268] sm:$0xff] }
 0x29f   : > { %4484 = vmatmul.mubr.f32.vlgmr.msra.gmra.mrb[0].mxu1 %v3147_v41  ;;  %v3313_v37 = vrot.slane %v3312_v36, 1  ;;  %v3408_v5 = vrot.slane %v3407_v3, 1 }
 0x2a0   : > { %4791 = vmatpush3.bf16.msra.mxu1 %v4790_v40  ;;  %4518 = vmatprep.mubr.msk.f32.mxu1 %vm5329_vm2, %v5330_v13  ;;  %v4838_v40 = vpack.c.bf16 %v3411_v39, %v3410_v38 }
 0x2a1   : > { %4792 = vmatprep.subr.bf16.mxu1 %v5328_v55  ;;  %v3314_v41 = vmax.f32 %v3312_v36, %v3313_v37 }
 0x2a4   : > { %4794 = vmatpush3.bf16.msra.mxu1 %v4793_v44  ;;  %v4841_v44 = vpack.c.bf16 %v3413_v43, %v3412_v42  ;;  %v3601_v42 = vld [vmem:[#allocation11 + $0x8] sm:$0xff] }
 0x2a5   : > { %4795 = vmatprep.subr.bf16.mxu1 %v5328_v55 }
 0x2a8   : > { %4797 = vmatpush3.bf16.msra.mxu1 %v4796_v47  ;;  %v4844_v47 = vpack.c.bf16 %v3415_v46, %v3414_v45  ;;  %v3603_v45 = vld [vmem:[#allocation11 + $0x18] sm:$0xff]  ;;  %v3604_v46 = vld [vmem:[#allocation11 + $0x20] sm:$0xff] }
 0x2a9   : > { %4798 = vmatprep.subr.bf16.mxu1 %v5328_v55 }
 0x2ac   : > { %4800 = vmatpush3.bf16.msra.mxu1 %v4799_v51  ;;  %v4847_v51 = vpack.c.bf16 %v3417_v49, %v3416_v48  ;;  %v3605_v48 = vld [vmem:[#allocation11 + $0x28] sm:$0xff] }
 0x2ad   : > { %4801 = vmatprep.subr.bf16.mxu1 %v5328_v55  ;;  %v4892_v49 = vpack.c.bf16 %v3605_v48, %v3604_v46 }
 0x2b0   : > { %4803 = vmatpush3.bf16.msra.mxu1 %v4802_v56  ;;  %v4850_v56 = vpack.c.bf16 %v3419_v54, %v3418_v53 }
 0x2b1   : > { %4804 = vmatprep.subr.bf16.mxu1 %v5328_v55 }
 0x2b4   : > { %4806 = vmatpush3.bf16.msra.mxu1 %v4805_v60  ;;  %v4853_v60 = vpack.c.bf16 %v3421_v59, %v3420_v58 }
 0x2b5   : > { %4807 = vmatprep.subr.bf16.mxu1 %v5328_v55 }
 0x2b8   : > { %4809 = vmatpush3.bf16.msra.mxu1 %v4808_v0  ;;  %v4856_v0 = vpack.c.bf16 %v3423_v63, %v3422_v62  ;;  %v3592_v63 = vld [vmem:[#allocation10] sm:$0x1] }
 0x2b9   : > { %4810 = vmatprep.subr.bf16.mxu1 %v5328_v55 }
 0x2bc   : > { %4812 = vmatpush3.bf16.msra.mxu1 %v4811_v4  ;;  %v4859_v4 = vpack.c.bf16 %v3425_v2, %v3424_v1 }
 0x2bd   : > { %4813 = vmatprep.subr.bf16.mxu1 %v5328_v55 }
 0x2bf   : > { %4519 = vmatmul.mubr.f32.vlgmr.msra.gmra.mrb[2].mxu1 %v3123_v9  ;;  %v3409_v9 = vmax.f32 %v3407_v3, %v3408_v5 }
 0x2c0   : > { %4815 = vmatpush3.bf16.msra.mxu1 %v4814_v8  ;;  %4553 = vmatprep.mubr.msk.f32.mxu1 %vm5329_vm2, %v5330_v13  ;;  %v4862_v8 = vpack.c.bf16 %v3506_v7, %v3505_v6 }
 0x2c1   : > { %4816 = vmatprep.subr.bf16.mxu1 %v5328_v55 }
 0x2c4   : > { %4818 = vmatpush3.bf16.msra.mxu1 %v4817_v12  ;;  %v4865_v12 = vpack.c.bf16 %v3508_v11, %v3507_v10 }
 0x2c5   : > { %4819 = vmatprep.subr.bf16.mxu1 %v5328_v55 }
 0x2c8   : > { %4821 = vmatpush3.bf16.msra.mxu1 %v4820_v16  ;;  %v4868_v16 = vpack.c.bf16 %v3510_v15, %v3509_v14 }
 0x2c9   : > { %4822 = vmatprep.subr.bf16.mxu1 %v5328_v55 }
 0x2cc   : > { %4824 = vmatpush3.bf16.msra.mxu1 %v4823_v19  ;;  %v3498_v19 = vsel %vm3497_vm10, %v5824_v27, -inf  ;;  %v3517_v27 = vld [vmem:[#allocation8 + $0x260] sm:$0xff] }
 0x2cd   : > { %4825 = vmatprep.subr.bf16.mxu1 %v5328_v55  ;;  %v3499_v21 = vrot.slane %v3498_v19, 4 }
 0x2cf   : > { %v3500_v25 = vmax.f32 %v3498_v19, %v3499_v21 }
 0x2d0   : > { %4827 = vmatpush3.bf16.msra.mxu1 %v4826_v23  ;;  %v3514_v23 = vld [vmem:[#allocation8 + $0x248] sm:$0xff] }
 0x2d1   : > { %4828 = vmatprep.subr.bf16.mxu1 %v5328_v55  ;;  %v4874_v24 = vpack.c.bf16 %v3514_v23, %v3513_v22  ;;  %v3501_v30 = vrot.slane %v3500_v25, 2 }
 0x2d3   : > { %v3502_v36 = vmax.f32 %v3500_v25, %v3501_v30 }
 0x2d4   : > { %4830 = vmatpush3.bf16.msra.mxu1 %v4829_v28  ;;  %v3516_v28 = vld [vmem:[#allocation8 + $0x258] sm:$0xff] }
 0x2d5   : > { %4831 = vmatprep.subr.bf16.mxu1 %v5328_v55  ;;  %v4877_v29 = vpack.c.bf16 %v3516_v28, %v3515_v26  ;;  %v3503_v37 = vrot.slane %v3502_v36, 1 }
 0x2d7   : > { %v3504_v38 = vmax.f32 %v3502_v36, %v3503_v37 }
 0x2d8   : > { %4833 = vmatpush3.bf16.msra.mxu1 %v4832_v32  ;;  %v4880_v32 = vpack.c.bf16 %v3518_v31, %v3517_v27 }
 0x2d9   : > { %4834 = vmatprep.subr.bf16.mxu1 %v5328_v55 }
 0x2dc   : > { %4836 = vmatpush3.bf16.msra.mxu1 %v4835_v33  ;;  %v4883_v33 = vpack.c.bf16 %v3520_v35, %v3519_v34 }
 0x2dd   : > { %4837 = vmatprep.subr.bf16.mxu1 %v5328_v55 }
 0x2df   : > { %4554 = vmatmul.mubr.f32.vlgmr.msra.gmra.mrb[4].mxu1 %v3314_v41  ;;  %v3600_v41 = vld [vmem:[#allocation11] sm:$0xff] }
 0x2e0   : > { %4839 = vmatpush3.bf16.msra.mxu1 %v4838_v40  ;;  %4588 = vmatprep.mubr.msk.f32.mxu1 %vm5329_vm2, %v5330_v13  ;;  %v4886_v43 = vpack.c.bf16 %v3601_v42, %v3600_v41 }
 0x2e1   : > { %4840 = vmatprep.subr.bf16.mxu1 %v5328_v55 }
 0x2e4   : > { %4842 = vmatpush3.bf16.msra.mxu1 %v4841_v44  ;;  %v3602_v44 = vld [vmem:[#allocation11 + $0x10] sm:$0xff] }
 0x2e5   : > { %4843 = vmatprep.subr.bf16.mxu1 %v5328_v55 }
 0x2e8   : > { %4845 = vmatpush3.bf16.msra.mxu1 %v4844_v47  ;;  %v4889_v47 = vpack.c.bf16 %v3603_v45, %v3602_v44 }
 0x2e9   : > { %4846 = vmatprep.subr.bf16.mxu1 %v5328_v55 }
 0x2ec   : > { %4848 = vmatpush3.bf16.msra.mxu1 %v4847_v51  ;;  %v3607_v51 = vld [vmem:[#allocation11 + $0x38] sm:$0xff] }
 0x2ed   : > { %4849 = vmatprep.subr.bf16.mxu1 %v5328_v55 }
 0x2f0   : > { %4851 = vmatpush3.bf16.msra.mxu1 %v4850_v56 }
 0x2f1   : > { %4852 = vmatprep.subr.bf16.mxu1 %v5328_v55 }
 0x2f4   : > { %4854 = vmatpush3.bf16.msra.mxu1 %v4853_v60 }
 0x2f5   : > { %4855 = vmatprep.subr.bf16.mxu1 %v5328_v55 }
 0x2f8   : > { %4857 = vmatpush3.bf16.msra.mxu1 %v4856_v0 }
 0x2f9   : > { %4858 = vmatprep.subr.bf16.mxu1 %v5328_v55 }
 0x2fc   : > { %4860 = vmatpush3.bf16.msra.mxu1 %v4859_v4 }
 0x2fd   : > { %4861 = vmatprep.subr.bf16.mxu1 %v5328_v55 }
 0x2ff   : > { %4589 = vmatmul.mubr.f32.vlgmr.msra.gmra.mrb[6].mxu1 %v3409_v9 }
 0x300   : > { %4863 = vmatpush3.bf16.msra.mxu1 %v4862_v8  ;;  %4623 = vmatprep.mubr.msk.f32.mxu1 %vm5329_vm2, %v5330_v13 }
 0x301   : > { %4864 = vmatprep.subr.bf16.mxu1 %v5328_v55 }
 0x304   : > { %4866 = vmatpush3.bf16.msra.mxu1 %v4865_v12 }
 0x305   : > { %4867 = vmatprep.subr.bf16.mxu1 %v5328_v55 }
 0x308   : > { %4869 = vmatpush3.bf16.msra.mxu1 %v4868_v16 }
 0x309   : > { %4870 = vmatprep.subr.bf16.mxu1 %v5328_v55 }
 0x30c   : > { %4872 = vmatpush3.bf16.msra.mxu1 %v4871_v20 }
 0x30d   : > { %4873 = vmatprep.subr.bf16.mxu1 %v5328_v55 }
 0x310   : > { %4875 = vmatpush3.bf16.msra.mxu1 %v4874_v24 }
 0x311   : > { %4876 = vmatprep.subr.bf16.mxu1 %v5328_v55 }
 0x314   : > { %4878 = vmatpush3.bf16.msra.mxu1 %v4877_v29 }
 0x315   : > { %4879 = vmatprep.subr.bf16.mxu1 %v5328_v55 }
 0x318   : > { %4881 = vmatpush3.bf16.msra.mxu1 %v4880_v32 }
 0x319   : > { %4882 = vmatprep.subr.bf16.mxu1 %v5328_v55 }
 0x31c   : > { %4884 = vmatpush3.bf16.msra.mxu1 %v4883_v33 }
 0x31d   : > { %4885 = vmatprep.subr.bf16.mxu1 %v5328_v55 }
 0x31f   : > { %4624 = vmatmul.mubr.f32.vlgmr.msra.gmra.mrb[8].mxu1 %v3504_v38 }
 0x320   : > { %4642 = vmatprep.mubr.msk.f32.mxu1 %vm5329_vm2, %v5330_v13  ;;  %4887 = vmatpush3.bf16.msra.mxu1 %v4886_v43  ;;  %v4895_v13 = vpack.c.bf16 %v3607_v51, %v3606_v50 }
 0x321   : > { %4888 = vmatprep.subr.bf16.mxu1 %v5328_v55 }
 0x324   : > { %4890 = vmatpush3.bf16.msra.mxu1 %v4889_v47 }
 0x325   : > { %4891 = vmatprep.subr.bf16.mxu1 %v5328_v55 }
 0x328   : > { %4893 = vmatpush3.bf16.msra.mxu1 %v4892_v49 }
 0x329   : > { %4894 = vmatprep.subr.bf16.mxu1 %v5328_v55 }
 0x32c   : > { %4896 = vmatpush3.bf16.msra.mxu1 %v4895_v13 }
 0x372   : > { %v3230_v39 = vpop.f32.mrb[0].mxu1 }
 0x373   : > { %v4485_v40 = vpop.f32.mrb[1].mxu1 }
 0x392   : > { %v3300_v52 = vpop.f32.mrb[2].mxu1 }
 0x393   : > { %v3301_v53 = vadd.f32 %v3300_v52, %v3230_v39  ;;  %v4520_v54 = vpop.f32.mrb[3].mxu1 }
 0x3b2   : > { %v3397_v56 = vpop.f32.mrb[4].mxu1 }
 0x3b3   : > { %v3401_v57 = vadd.f32 %v3397_v56, %v3301_v53  ;;  %v4555_v58 = vpop.f32.mrb[5].mxu1 }
 0x3d2   : > { %v3492_v59 = vpop.f32.mrb[6].mxu1 }
 0x3d3   : > { %v3496_v60 = vadd.f32 %v3492_v59, %v3401_v57  ;;  %v4590_v61 = vpop.f32.mrb[7].mxu1 }
 0x3f2   : > { %v3587_v62 = vpop.f32.mrb[8].mxu1 }
 0x3f3   : > { %v3591_v0 = vadd.f32 %v3587_v62, %v3496_v60  ;;  %v4625_v1 = vpop.f32.mrb[9].mxu1 }
 0x3f5   : > { %v3593_v2 = vadd.f32 %v3592_v63, %v3591_v0 }
 0x3f7   : > { %v3595_v3 = vmin.f32 %v3593_v2, 0.0  ;;  %vm3594_vm12 = vcmp.gt.f32.partialorder %v3593_v2, 0.0 }
 0x3f9   : > { %v3596_v4 = vmul.f32 1.442695, %v3595_v3 }
 0x3fb   : > { %5064 = vpow2.f32 %v3596_v4 }
 0x405   : > { %v5065_v5 = vpop.eup %5064 }
 0x406   : > { %v3932_v55 = vadd.f32 -1.0, %v5065_v5 }
 0x408   : > { %v3599_v6 = vsel %vm3594_vm12, %v3593_v2, %v3932_v55 }
 0x409   : > { %4643 = vmatmul.mubr.msk.f32.vlgmr.msra.gmra.mrb[10].mxu1 %vm3608_vm11, %v3599_v6 }
 0x4dc   : > { %v3678_v7 = vpop.f32.mrb[10].mxu1 }
 0x4dd   : > { %v4644_v8 = vpop.f32.mrb[11].mxu1  ;;  %v3683_v9 = vsel %vm3682_vm13, %v3678_v7, -inf }
 0x4de   : > { %3684 = vmax.xlane.f32.xlu0 %v3683_v9 }
 0x56b   : > { %v3685_v10 = vpop.xlane.xlu0 %3684 }
 0x56c   : > { %v3686_v11 = vsub.f32 %v3678_v7, %v3685_v10 }
 0x56e   : > { %v3687_v12 = vmul.f32 1.442695, %v3686_v11 }
 0x570   : > { %5066 = vpow2.f32 %v3687_v12 }
 0x57a   : > { %v5067_v14 = vpop.eup %5066 }
 0x57b   : > { %v3689_v15 = vsel %vm3682_vm13, %v5067_v14, 0.0 }
 0x57c   : > { %3690 = vadd.xlane.f32.xlu0 %v3689_v15 }
 0x609   : > { %v3691_v16 = vpop.xlane.xlu0 %3690 }
 0x60a   : > { %5068 = vlog2.f32 %v3691_v16 }
 0x614   : > { %v5069_v17 = vpop.eup %5068 }
 0x615   : > { %v3693_v18 = vmul.f32 0.6931472, %v5069_v17 }
 0x617   : > { %v3694_v19 = vadd.f32 %v3693_v18, %v3685_v10 }
 0x619   : > { %v3695_v20 = vsub.f32 %v3678_v7, %v3694_v19 }
 0x61b   : > { %3696 = vst.msk [vmem:[%s337_s25] sm:$0x1] %vm3682_vm13, %v3695_v20 }
 0x61c   : > { %5253 = shalt.err (!%p5250_p8)
}
 0x61d   : > { %s5254_s26 = scalar_lea.hbm %s5885_s16, 16  ;;  %s5258_s14 = scalar_lea.hbm %s5936_s6, 32 }
 0x61e   : > { %p5255_p6 = scmp.ne.s32.totalorder %s5885_s16, %s5254_s26  ;;  %p5259_p0 = scmp.lt.u32.totalorder %s5885_s16, %s5936_s6 }
 0x61f   : > { %p5260_p5 = scmp.lt.u32.totalorder %s5258_s14, %s5254_s26  ;;  %p5262_p7 = scmp.lt.u32.totalorder %s5254_s26, %s5885_s16 }
 0x620   : > { %p5256_p10 = pnand %p5255_p6, %p5959_p4 }
 0x621   : > { %p5261_p9 = por %p5260_p5, %p5259_p0 }
 0x622   : > { %p5257_p11 = pneg %p5256_p10 }
 0x623   : > { %p5263_p12 = por %p5262_p7, %p5261_p9 }
 0x625   : > { %p5264_p13 = pnand %p5263_p12, %p5257_p11 }
 0x627   : > { %5267 = shalt.err (!%p5264_p13)
}
 0x628   : > { %4980 = dma.vmem_to_hbm [thread:$0]  (%p5959_p4), %s5887_s12, 16, %s5885_s16, %s3698_s11  }
 0x629 PF: > { %s3722_s25 = sand.u32 1, %s5306_s21   ;;  %p5960_p1 = scmp.ne.s32.totalorder %s5948_s10, 0 }
 0x62a   : > { %p5961_p3 = scmp.ge.s32.totalorder %s5318_s24, 2  ;;  %s3723_s18 = scalar_lea.sflag [#allocation4], %s3722_s25 }
 0x62c   : > { %p5003_p2 = pnand %p5961_p3, %p5960_p1 }
 0x62e   : > { %5301 = dma.done.wait (!%p5003_p2), %s3723_s18, 16  }
 0x62f   : > { %5303 = vsyncadd (!%p5003_p2), %s3723_s18, 4294967280  ;;  %p22_p8 = scmp.ge.s32.totalorder %s5535_s15, 4   ;;  %s5962_s21 = smov %s5310_s22 }
 0x630   : > { %s5963_s22 = smov %s5314_s23  ;;  %s5964_s23 = smov %s5547_s17 }
 0x631   : > { %s5965_s24 = smov %s5535_s15  ;;  %24 = sbr.rel (!%p22_p8) target bundleno = 8 (0x8), region = 138 }
 0x638   :  { %3727 = vsyncpa [#allocation3], 1 }
 0x639   :  { %3729 = vsyncpa [#allocation3 + $0x1], 1 }
 0x63a   :  { %3730 = vsyncpa [#allocation6], 1 }
 0x63b   :  { %3731 = vsyncpa [#allocation9], 1 }
 0x63c   :  { %3732 = vsyncpa [#allocation12], 1 }
 0x63d   :  { %3733 = vsyncpa [#allocation4], 1 }
 0x63e   :  { %3735 = vsyncpa [#allocation4 + $0x1], 1 }

</bundles_post_ra>
